<compile_context>
chip_gen: v7x
topology: tpu7x:2x2x1
jax: 0.10.0
libtpu: 0.0.40
codegen_flags: <defaults>
</compile_context>

<pallas_src>
import jax
import jax.numpy as jnp
from jax.experimental import pallas as pl
from jax.experimental.pallas import tpu as pltpu


def _mlp_kernel(x_ref, w1_ref, b1_ref, w2_ref, b2_ref, w3t_ref, b3_ref, o_ref):
    f32 = jnp.float32
    # Layer 1: (tb, Dp) bf16 @ (Dp, 256) bf16 -> f32 accum; bias + ReLU in f32.
    h1 = jnp.dot(x_ref[...], w1_ref[...], preferred_element_type=f32)
    h1 = jnp.maximum(h1 + b1_ref[...], 0.0)
    # Layer 2: (tb, 256) bf16 @ (256, 128) bf16 -> f32 accum; bias + ReLU in f32.
    h2 = jnp.dot(h1.astype(jnp.bfloat16), w2_ref[...], preferred_element_type=f32)
    h2 = jnp.maximum(h2 + b2_ref[...], 0.0)              # (tb, 128) f32
    # Layer 3 computed transposed so batch lands on lanes:
    #   (8, 128) @ (128, tb) -> (8, tb); only row 0 of w3t is real (rest zero-pad).
    logits = jnp.dot(w3t_ref[...], h2.T, preferred_element_type=f32)[0:1, :]
    logits = logits + b3_ref[0]                          # (1, tb)
    # Sigmoid: EUP exp + approx reciprocal (off the VPU critical path).
    y = pl.reciprocal(1.0 + jnp.exp(-logits), approx=True)
    # Lane-dense 128-wide stores into the (1, tb//128, 128) output block.
    for c in range(o_ref.shape[1]):                      # static unroll (2-4 iters)
        o_ref[:, c:c + 1, :] = y[:, None, c * 128:(c + 1) * 128].astype(o_ref.dtype)


def _round_up(n, m):
    return (n + m - 1) // m * m


def discriminator_forward(x, params, *, tb=None):
    """x: (B, image_dim) float32. Returns (B, 1) float32 sigmoid probabilities."""
    w1, b1, w2, b2, w3, b3 = params
    B, D = x.shape
    H1 = w1.shape[1]   # 256
    H2 = w2.shape[1]   # 128

    Dp = _round_up(D, 128)

    if tb is None:
        # Multiple of 256 fills the v6e/v7x MXU M dimension; <=1024 rows keeps
        # >=2 grid steps for realistic batches so v7x can use both TensorCores.
        tb = 256 if B <= 1024 else 512
    # Cap tb so the double-buffered bf16 x tile stays under ~16 MiB (v7x VMEM).
    max_tb = max(128, (16 * 1024 * 1024) // (2 * 2 * Dp) // 128 * 128)
    tb = min(tb, max_tb)

    Bp = _round_up(B, tb)
    nlt = tb // 128

    # Pad batch / feature dims; cast the big matmul operands to bf16.
    xp = jnp.zeros((Bp, Dp), jnp.bfloat16).at[:B, :D].set(x.astype(jnp.bfloat16))
    w1p = jnp.zeros((Dp, H1), jnp.bfloat16).at[:D, :].set(w1.astype(jnp.bfloat16))
    w2b = w2.astype(jnp.bfloat16)
    b1r = b1.reshape(1, H1).astype(jnp.float32)
    b2r = b2.reshape(1, H2).astype(jnp.float32)
    # Last layer, transposed and padded to 8 sublanes: row 0 = w3^T, rows 1..7 = 0.
    w3t8 = jnp.zeros((8, H2), jnp.float32).at[0, :].set(
        w3.reshape(H2).astype(jnp.float32))
    b3s = b3.reshape(1).astype(jnp.float32)               # scalar, lives in SMEM

    grid = (Bp // tb,)

    out = pl.pallas_call(
        _mlp_kernel,
        out_shape=jax.ShapeDtypeStruct((Bp // tb, nlt, 128), jnp.float32),
        grid_spec=pltpu.PrefetchScalarGridSpec(
            num_scalar_prefetch=0,
            grid=grid,
            in_specs=[
                pl.BlockSpec((tb, Dp), lambda i: (i, 0)),           # x batch tile
                pl.BlockSpec((Dp, H1), lambda i: (0, 0)),           # W1 (resident)
                pl.BlockSpec((1, H1), lambda i: (0, 0)),            # b1
                pl.BlockSpec((H1, H2), lambda i: (0, 0)),           # W2 (resident)
                pl.BlockSpec((1, H2), lambda i: (0, 0)),            # b2
                pl.BlockSpec((8, H2), lambda i: (0, 0)),            # W3^T (8-row pad)
                pl.BlockSpec(memory_space=pltpu.MemorySpace.SMEM),  # b3 scalar
            ],
            out_specs=pl.BlockSpec((1, nlt, 128), lambda i: (i, 0, 0)),
        ),
        compiler_params=pltpu.CompilerParams(
            dimension_semantics=("parallel",),
        ),
    )(xp, w1p, b1r, w2b, b2r, w3t8, b3s)

    # (Bp//tb, tb//128, 128) flattens row-major to batch order; drop padding.
    return out.reshape(Bp)[:B].reshape(B, 1)


def init_params(key, image_dim):
    """PyTorch-Linear-style init (U[-1/sqrt(fan_in), 1/sqrt(fan_in)]); weights (in, out)."""
    ks = jax.random.split(key, 6)

    def lin(kw, kb, fan_in, fan_out):
        bound = 1.0 / jnp.sqrt(fan_in)
        w = jax.random.uniform(kw, (fan_in, fan_out), jnp.float32, -bound, bound)
        b = jax.random.uniform(kb, (fan_out,), jnp.float32, -bound, bound)
        return w, b

    w1, b1 = lin(ks[0], ks[1], image_dim, 256)
    w2, b2 = lin(ks[2], ks[3], 256, 128)
    w3, b3 = lin(ks[4], ks[5], 128, 1)
    return (w1, b1, w2, b2, w3, b3)


def _reference(x, params):
    w1, b1, w2, b2, w3, b3 = params
    h = jnp.maximum(x @ w1 + b1, 0.0)
    h = jnp.maximum(h @ w2 + b2, 0.0)
    return jax.nn.sigmoid(h @ w3 + b3)


if __name__ == "__main__":
    key = jax.random.PRNGKey(0)
    k_x, k_p = jax.random.split(key)

    batch = 300        # not a multiple of the tile -> exercises batch padding
    image_dim = 784    # not a multiple of 128      -> exercises K padding
    x = jax.random.normal(k_x, (batch, image_dim), jnp.float32)
    params = init_params(k_p, image_dim)

    out = discriminator_forward(x, params)
    out = jax.block_until_ready(out)

    ref = _reference(x, params)
    assert out.shape == (batch, 1)
    # bf16 matmul inputs -> loosen tolerance vs the f32 reference.
    assert jnp.allclose(out, ref, atol=2e-2, rtol=2e-2), (
        f"mismatch vs reference: max abs err {jnp.max(jnp.abs(out - ref)):.3e}")

    print("KERNEL_OK")
</pallas_src>

<mosaic_0001>
module attributes {stable_mosaic.version = 11 : i64} {
  func.func @_mlp_kernel(%arg0: i32, %arg1: memref<256x896xbf16, #tpu.memory_space<vmem>>, %arg2: memref<896x256xbf16, #tpu.memory_space<vmem>>, %arg3: memref<1x256xf32, #tpu.memory_space<vmem>>, %arg4: memref<256x128xbf16, #tpu.memory_space<vmem>>, %arg5: memref<1x128xf32, #tpu.memory_space<vmem>>, %arg6: memref<8x128xf32, #tpu.memory_space<vmem>>, %arg7: memref<1xf32, #tpu.memory_space<smem>>, %arg8: memref<1x2x128xf32, #tpu.memory_space<vmem>>) attributes {dimension_semantics = [#tpu.dimension_semantics<parallel>], iteration_bounds = array<i64: 2>, scalar_prefetch = 0 : i64, scratch_operands = 0 : i64, tpu.core_type = #tpu.core_type<tc>, window_params = [{transform_indices = @transform_0, window_bounds = array<i64: 256, 896>}, {pipeline_mode = #tpu.pipeline_mode<synchronous>, transform_indices = @transform_1, window_bounds = array<i64: 896, 256>}, {pipeline_mode = #tpu.pipeline_mode<synchronous>, transform_indices = @transform_2, window_bounds = array<i64: 1, 256>}, {pipeline_mode = #tpu.pipeline_mode<synchronous>, transform_indices = @transform_3, window_bounds = array<i64: 256, 128>}, {pipeline_mode = #tpu.pipeline_mode<synchronous>, transform_indices = @transform_4, window_bounds = array<i64: 1, 128>}, {pipeline_mode = #tpu.pipeline_mode<synchronous>, transform_indices = @transform_5, window_bounds = array<i64: 8, 128>}, {transform_indices = @transform_6, window_bounds = array<i64: 1>}, {transform_indices = @transform_7, window_bounds = array<i64: 1, 2, 128>}]} {
    %c0 = arith.constant 0 : index
    %c0_0 = arith.constant 0 : index
    %0 = vector.load %arg1[%c0, %c0_0] : memref<256x896xbf16, #tpu.memory_space<vmem>>, vector<256x896xbf16>
    %c0_1 = arith.constant 0 : index
    %c0_2 = arith.constant 0 : index
    %1 = vector.load %arg2[%c0_1, %c0_2] : memref<896x256xbf16, #tpu.memory_space<vmem>>, vector<896x256xbf16>
    %cst = arith.constant dense<0.000000e+00> : vector<256x256xf32>
    %2 = tpu.matmul %0, %1, %cst {dimension_numbers = #tpu.dot_dimension_numbers<[1], [0], [0], [1], [0, 0, 1, 1], [], []>} : vector<256x896xbf16>, vector<896x256xbf16>, vector<256x256xf32> -> vector<256x256xf32>
    %c0_3 = arith.constant 0 : index
    %c0_4 = arith.constant 0 : index
    %3 = vector.load %arg3[%c0_3, %c0_4] : memref<1x256xf32, #tpu.memory_space<vmem>>, vector<1x256xf32>
    %4 = vector.broadcast %3 : vector<1x256xf32> to vector<256x256xf32>
    %5 = arith.addf %2, %4 : vector<256x256xf32>
    %cst_5 = arith.constant 0.000000e+00 : f32
    %6 = vector.broadcast %cst_5 : f32 to vector<256x256xf32>
    %7 = arith.maximumf %5, %6 : vector<256x256xf32>
    %8 = arith.truncf %7 : vector<256x256xf32> to vector<256x256xbf16>
    %c0_6 = arith.constant 0 : index
    %c0_7 = arith.constant 0 : index
    %9 = vector.load %arg4[%c0_6, %c0_7] : memref<256x128xbf16, #tpu.memory_space<vmem>>, vector<256x128xbf16>
    %cst_8 = arith.constant dense<0.000000e+00> : vector<256x128xf32>
    %10 = tpu.matmul %8, %9, %cst_8 {dimension_numbers = #tpu.dot_dimension_numbers<[1], [0], [0], [1], [0, 0, 1, 1], [], []>} : vector<256x256xbf16>, vector<256x128xbf16>, vector<256x128xf32> -> vector<256x128xf32>
    %c0_9 = arith.constant 0 : index
    %c0_10 = arith.constant 0 : index
    %11 = vector.load %arg5[%c0_9, %c0_10] : memref<1x128xf32, #tpu.memory_space<vmem>>, vector<1x128xf32>
    %12 = vector.broadcast %11 : vector<1x128xf32> to vector<256x128xf32>
    %13 = arith.addf %10, %12 : vector<256x128xf32>
    %cst_11 = arith.constant 0.000000e+00 : f32
    %14 = vector.broadcast %cst_11 : f32 to vector<256x128xf32>
    %15 = arith.maximumf %13, %14 : vector<256x128xf32>
    %c0_12 = arith.constant 0 : index
    %c0_13 = arith.constant 0 : index
    %16 = vector.load %arg6[%c0_12, %c0_13] : memref<8x128xf32, #tpu.memory_space<vmem>>, vector<8x128xf32>
    %17 = tpu.transpose %15, [1, 0] : vector<256x128xf32> -> vector<128x256xf32>
    %cst_14 = arith.constant dense<0.000000e+00> : vector<8x256xf32>
    %18 = tpu.matmul %16, %17, %cst_14 {dimension_numbers = #tpu.dot_dimension_numbers<[1], [0], [0], [1], [0, 0, 1, 1], [], []>} : vector<8x128xf32>, vector<128x256xf32>, vector<8x256xf32> -> vector<8x256xf32>
    %19 = vector.extract_strided_slice %18 {offsets = [0, 0], sizes = [1, 256], strides = [1, 1]} : vector<8x256xf32> to vector<1x256xf32>
    %c0_15 = arith.constant 0 : index
    %20 = memref.load %arg7[%c0_15] : memref<1xf32, #tpu.memory_space<smem>>
    %21 = vector.broadcast %20 : f32 to vector<1x256xf32>
    %22 = arith.addf %19, %21 : vector<1x256xf32>
    %cst_16 = arith.constant 0.000000e+00 : f32
    %23 = vector.broadcast %cst_16 : f32 to vector<1x256xf32>
    %24 = arith.subf %23, %22 : vector<1x256xf32>
    %25 = math.exp %24 : vector<1x256xf32>
    %cst_17 = arith.constant 1.000000e+00 : f32
    %26 = vector.broadcast %cst_17 : f32 to vector<1x256xf32>
    %27 = arith.addf %26, %25 : vector<1x256xf32>
    %28 = tpu.reciprocal %27 {approx = true} : vector<1x256xf32> -> vector<1x256xf32>
    %29 = vector.extract_strided_slice %28 {offsets = [0, 0], sizes = [1, 128], strides = [1, 1]} : vector<1x256xf32> to vector<1x128xf32>
    %30 = vector.shape_cast %29 : vector<1x128xf32> to vector<1x1x128xf32>
    %c0_18 = arith.constant 0 : index
    %c0_19 = arith.constant 0 : index
    %c0_20 = arith.constant 0 : index
    %31 = vector.load %arg8[%c0_18, %c0_19, %c0_20] : memref<1x2x128xf32, #tpu.memory_space<vmem>>, vector<1x1x128xf32>
    tpu.vector_store %arg8[%c0_18, %c0_19, %c0_20], %30 {strides = array<i32>} : memref<1x2x128xf32, #tpu.memory_space<vmem>>, vector<1x1x128xf32>,
    %32 = vector.extract_strided_slice %28 {offsets = [0, 128], sizes = [1, 128], strides = [1, 1]} : vector<1x256xf32> to vector<1x128xf32>
    %33 = vector.shape_cast %32 : vector<1x128xf32> to vector<1x1x128xf32>
    %c0_21 = arith.constant 0 : index
    %c1 = arith.constant 1 : index
    %c0_22 = arith.constant 0 : index
    %34 = vector.load %arg8[%c0_21, %c1, %c0_22] : memref<1x2x128xf32, #tpu.memory_space<vmem>>, vector<1x1x128xf32>
    tpu.vector_store %arg8[%c0_21, %c1, %c0_22], %33 {strides = array<i32>} : memref<1x2x128xf32, #tpu.memory_space<vmem>>, vector<1x1x128xf32>,
    return
  }
  func.func @transform_0(%arg0: i32) -> (i32, i32) {
    %c0_i32 = arith.constant 0 : i32
    %c0_i32_0 = arith.constant 0 : i32
    return %arg0, %c0_i32 : i32, i32
  }
  func.func @transform_1(%arg0: i32) -> (i32, i32) {
    %c0_i32 = arith.constant 0 : i32
    %c0_i32_0 = arith.constant 0 : i32
    %c0_i32_1 = arith.constant 0 : i32
    return %c0_i32, %c0_i32_0 : i32, i32
  }
  func.func @transform_2(%arg0: i32) -> (i32, i32) {
    %c0_i32 = arith.constant 0 : i32
    %c0_i32_0 = arith.constant 0 : i32
    %c0_i32_1 = arith.constant 0 : i32
    return %c0_i32, %c0_i32_0 : i32, i32
  }
  func.func @transform_3(%arg0: i32) -> (i32, i32) {
    %c0_i32 = arith.constant 0 : i32
    %c0_i32_0 = arith.constant 0 : i32
    %c0_i32_1 = arith.constant 0 : i32
    return %c0_i32, %c0_i32_0 : i32, i32
  }
  func.func @transform_4(%arg0: i32) -> (i32, i32) {
    %c0_i32 = arith.constant 0 : i32
    %c0_i32_0 = arith.constant 0 : i32
    %c0_i32_1 = arith.constant 0 : i32
    return %c0_i32, %c0_i32_0 : i32, i32
  }
  func.func @transform_5(%arg0: i32) -> (i32, i32) {
    %c0_i32 = arith.constant 0 : i32
    %c0_i32_0 = arith.constant 0 : i32
    %c0_i32_1 = arith.constant 0 : i32
    return %c0_i32, %c0_i32_0 : i32, i32
  }
  func.func @transform_6(%arg0: i32) -> i32 {
    %c0_i32 = arith.constant 0 : i32
    %c0_i32_0 = arith.constant 0 : i32
    return %c0_i32 : i32
  }
  func.func @transform_7(%arg0: i32) -> (i32, i32, i32) {
    %c0_i32 = arith.constant 0 : i32
    %c0_i32_0 = arith.constant 0 : i32
    %c0_i32_1 = arith.constant 0 : i32
    return %arg0, %c0_i32, %c0_i32_0 : i32, i32, i32
  }
}

</mosaic_0001>

<bundles_post_ra>
// kernel: tpu_custom_call.1
= control target key start
LH: loop header
LB: loop body
LE: loop exit
PB: predicated region body
PF: predicated region fallthrough
CT: control target
= control target key end

     0   :  { %s5291_s0 = inlined_call_operand.hbm [shape: bf16[512,896], index: 0, kind: input, shape index: {}]   ;;  %s5292_s1 = inlined_call_operand.hbm [shape: bf16[896,256], index: 1, kind: input, shape index: {}]   ;;  %s5293_s2 = inlined_call_operand.vmem [shape: f32[1,256], index: 2, kind: input, shape index: {}]   ;;  %s5294_s3 = inlined_call_operand.hbm [shape: bf16[256,128], index: 3, kind: input, shape index: {}]   ;;  %s5295_s4 = inlined_call_operand.vmem [shape: f32[1,128], index: 4, kind: input, shape index: {}]   ;;  %s5296_s5 = inlined_call_operand.vmem [shape: f32[8,128], index: 5, kind: input, shape index: {}]   ;;  %s5297_s6 = inlined_call_operand.<no memory space> [shape: f32[1], index: 6, kind: input, shape index: {}]   ;;  %s5298_s7 = inlined_call_operand.hbm [shape: f32[2,2,128], index: 7, kind: output, shape index: {}]  }
   0x1   :  { %12 = sst [smem:[#allocation2]] %s5297_s6 }
   0x2   :  { %13 = vsyncpa [#allocation4], 0 }
   0x3   :  { %15 = vsyncpa [#allocation4 + $0x1], 0 }
   0x4   :  { %16 = vsyncpa [#allocation7], 0 }
   0x5   :  { %17 = vsyncpa [#allocation5], 0 }
   0x6   :  { %19 = vsyncpa [#allocation5 + $0x1], 0  ;;  %s4469_s26 = smov 0   ;;  %s4471_s27 = smov 0  }
   0x7   :  { %s4473_s28 = smov 0   ;;  %s4475_s29 = smov 0  }
   0x8 LB: > { %s4490_s6 = sadd.s32 4294967295, %s4413_s29   ;;  %s3105_s30 = sadd.s32 4294967294, %s4413_s29   ;;  %s4413_s29 = sphi %s4475_s29, %s5342_s29   ;;  %s4409_s28 = sphi %s4473_s28, %s5341_s28   ;;  %s4405_s27 = sphi %s4471_s27, %s5340_s27   ;;  %s4401_s26 = sphi %s4469_s26, %s5339_s26  }
   0x9   : > { %p45_p0 = scmp.ne.s32.totalorder %s4405_s27, %s4401_s26  ;;  %p5299_p1 = scmp.eq.s32.totalorder %s4490_s6, 0 }
   0xa   : > { %p201_p3 = scmp.eq.s32.totalorder %s3105_s30, 1  ;;  %p3106_p5 = scmp.ge.s32.totalorder %s4413_s29, 1 }
   0xb   : > { %p4499_p4 = por %p5299_p1, %p45_p0  ;;  %p208_p7 = scmp.lt.s32.totalorder %s4413_s29, 3 }
   0xc   : > { %p4504_p6 = por %p201_p3, %p45_p0  ;;  %s4415_s11 = smov [#allocation6]  }
   0xd   : > { %s5302_s8 = scalar_select %p4499_p4, 1, 0 }
   0xe   : > { %s5303_s9 = scalar_select %p4504_p6, 1, 0 }
   0xf   : > { %p4509_p8 = pnand %p3106_p5, %p208_p7  ;;  %s220_s12 = sshll.u32 %s4415_s11, 4  ;;  %s4513_s12 = int_to_ptr.vmem [resolvable:$true] %s220_s12 }
  0x10   : > { %s4416_s14 = smov [#allocation8]   ;;  %s4257_s18 = scalar_lea.hbm %s5292_s1, 14336 }
  0x11   : > { %p3843_p9 = pneg %p4509_p8  ;;  %s236_s15 = sshll.u32 %s4416_s14, 4  ;;  %s4524_s15 = int_to_ptr.vmem [resolvable:$true] %s236_s15 }
  0x12   : > { %p4258_p12 = scmp.ne.s32.totalorder %s5292_s1, %s4257_s18  ;;  %p4264_p5 = scmp.lt.u32.totalorder %s4257_s18, %s5292_s1 }
  0x13   : > { %p4520_p11 = pnand %p3843_p9, %p5299_p1 }
  0x15   : > { %p4259_p13 = pneg %p4520_p11 }
  0x17   : > { %p4260_p0 = pnand %p4259_p13, %p4258_p12 }
  0x19   : > { %p4261_p3 = pneg %p4260_p0 }
  0x1b   : > { %p4266_p7 = pnand %p4264_p5, %p4261_p3 }
  0x1d   : > { %4269 = shalt.err (!%p4266_p7)
}
  0x1e   : > { %s4270_s23 = scalar_lea.vmem %s4513_s12, 14336  ;;  %p4278_p2 = scmp.lt.s32.totalorder %s4513_s12, %s4513_s12 }
  0x1f   : > { %p4271_p9 = scmp.ne.s32.totalorder %s4513_s12, %s4270_s23  ;;  %p4279_p12 = scmp.lt.s32.totalorder %s4270_s23, %s4270_s23 }
  0x21   : > { %p4273_p10 = pnand %p4271_p9, %p4259_p13  ;;  %p4280_p0 = por %p4279_p12, %p4278_p2 }
  0x23   : > { %p4274_p1 = pneg %p4273_p10 }
  0x25   : > { %p4281_p6 = pnand %p4280_p0, %p4274_p1 }
  0x27   : > { %4284 = shalt.err (!%p4281_p6)
}
  0x28   : > { %s4417_s24 = smov 128   ;;  %s4418_s25 = smov 8  }
  0x29   : > { %3846 = dma.hbm_to_vmem [thread:$0]  (!%p4520_p11), %s5292_s1, 14336, %s4513_s12, [#allocation7], %s4417_s24, %s4417_s24, %s4418_s25  }
  0x2a   : > { %s4285_s17 = scalar_lea.hbm %s5294_s3, 2048 }
  0x2b   : > { %p4286_p2 = scmp.ne.s32.totalorder %s5294_s3, %s4285_s17  ;;  %p4292_p10 = scmp.lt.u32.totalorder %s4285_s17, %s5294_s3 }
  0x2d   : > { %p4288_p1 = pnand %p4286_p2, %p4259_p13 }
  0x2f   : > { %p4289_p6 = pneg %p4288_p1 }
  0x31   : > { %p4294_p3 = pnand %p4292_p10, %p4289_p6 }
  0x33   : > { %4297 = shalt.err (!%p4294_p3)
}
  0x34   : > { %s4298_s12 = scalar_lea.vmem %s4524_s15, 2048  ;;  %p4306_p12 = scmp.lt.s32.totalorder %s4524_s15, %s4524_s15 }
  0x35   : > { %p4299_p5 = scmp.ne.s32.totalorder %s4524_s15, %s4298_s12  ;;  %p4307_p0 = scmp.lt.s32.totalorder %s4298_s12, %s4298_s12 }
  0x37   : > { %p4301_p7 = pnand %p4299_p5, %p4259_p13  ;;  %p4308_p2 = por %p4307_p0, %p4306_p12 }
  0x39   : > { %p4302_p9 = pneg %p4301_p7 }
  0x3b   : > { %p4309_p1 = pnand %p4308_p2, %p4302_p9 }
  0x3d   : > { %4312 = shalt.err (!%p4309_p1)
}
  0x3e   : > { %s4419_s22 = smov 64   ;;  %s4420_s23 = smov 4  }
  0x3f   : > { %3849 = dma.hbm_to_vmem [thread:$0]  (!%p4520_p11), %s5294_s3, 2048, %s4524_s15, [#allocation7], %s4419_s22, %s4419_s22, %s4420_s23  }
  0x40   : > { %s4579_s30 = sadd.s32 1, %s4413_s29   ;;  %s32_s14 = sadd.s32 1, %s4409_s28 }
  0x41   : > { %s29_s11 = ssub.s32 %s4413_s29, %s4579_s30  ;;  %p39_p6 = scmp.ne.s32.totalorder %s4409_s28, %s4405_s27 }
  0x42   : > { %p30_p13 = scmp.eq.s32.totalorder %s29_s11, 0  ;;  %p40_p10 = scmp.eq.s32.totalorder %s4413_s29, 0 }
  0x43   : > { %p5306_p5 = scmp.eq.s32.totalorder %s4490_s6, 1  ;;  %p3860_p9 = scmp.lt.s32.totalorder %s4413_s29, 2 }
  0x44   : > { %s4588_s16 = scalar_select %p30_p13, %s4409_s28, %s32_s14  }
  0x45   : > { %p41_p3 = por %p40_p10, %p39_p6  ;;  %p4592_p7 = por %p5306_p5, %p39_p6 }
  0x46   : > { %s259_s13 = sand.u32 1, %s4409_s28   ;;  %s3829_s15 = smul.u32 14336, %s4413_s29 }
  0x47   : > { %s5307_s17 = scalar_select %p4592_p7, 1, 0 }
  0x48   : > { %s3828_s18 = smul.u32 896, %s259_s13  ;;  %p4599_p11 = pnand %p3860_p9, %p41_p3 }
  0x49   : > { %s4606_s12 = scalar_lea.hbm %s5291_s0, %s3829_s15  ;;  %s4610_s24 = scalar_lea.sflag [#allocation4], %s259_s13 }
  0x4a   : > { %s263_s22 = scalar_lea.vmem [#allocation3], %s3828_s18  ;;  %s4313_s25 = scalar_lea.hbm %s4606_s12, 14336 }
  0x4b   : > { %s271_s23 = sshll.u32 %s263_s22, 4  ;;  %p4314_p12 = scmp.ne.s32.totalorder %s4606_s12, %s4313_s25  ;;  %s4608_s23 = int_to_ptr.vmem [resolvable:$true] %s271_s23 }
  0x4c   : > { %p4315_p0 = pneg %p4599_p11  ;;  %s4318_s15 = scalar_lea.hbm %s5291_s0, 28672 }
  0x4d   : > { %p4319_p13 = scmp.lt.u32.totalorder %s4606_s12, %s5291_s0  ;;  %p4320_p6 = scmp.lt.u32.totalorder %s4318_s15, %s4313_s25 }
  0x4e   : > { %p4316_p2 = pnand %p4315_p0, %p4314_p12  ;;  %p4322_p3 = scmp.lt.u32.totalorder %s4313_s25, %s4606_s12 }
  0x4f   : > { %p4321_p10 = por %p4320_p6, %p4319_p13 }
  0x50   : > { %p4317_p1 = pneg %p4316_p2 }
  0x51   : > { %p4323_p5 = por %p4322_p3, %p4321_p10 }
  0x53   : > { %p4324_p9 = pnand %p4323_p5, %p4317_p1 }
  0x55   : > { %4327 = shalt.err (!%p4324_p9)
}
  0x56   : > { %s4328_s13 = scalar_lea.vmem %s4608_s23, 14336  ;;  %s4421_s18 = smov [#allocation3]  }
  0x57   : > { %p4329_p12 = scmp.ne.s32.totalorder %s4608_s23, %s4328_s13  ;;  %s4333_s22 = sshll.u32 %s4421_s18, 4  ;;  %s4334_s22 = int_to_ptr.vmem [resolvable:$false] %s4333_s22 }
  0x58   : > { %s4335_s11 = scalar_lea.vmem %s4334_s22, 28672  ;;  %p4336_p4 = scmp.lt.s32.totalorder %s4608_s23, %s4334_s22 }
  0x59   : > { %p4331_p2 = pnand %p4329_p12, %p4315_p0  ;;  %p4337_p13 = scmp.lt.s32.totalorder %s4335_s11, %s4328_s13 }
  0x5b   : > { %p4332_p7 = pneg %p4331_p2  ;;  %p4338_p6 = por %p4337_p13, %p4336_p4 }
  0x5d   : > { %p4339_p10 = pnand %p4338_p6, %p4332_p7 }
  0x5f   : > { %4342 = shalt.err (!%p4339_p10)
}
  0x60   : > { %s4422_s25 = smov 448   ;;  %s4423_s14 = smov 28  }
  0x61   : > { %3853 = dma.hbm_to_vmem [thread:$0]  (!%p4599_p11), %s4606_s12, 14336, %s4608_s23, %s4610_s24, %s4422_s25, %s4422_s25, %s4423_s14  }
  0x62   : > { %283 = sbr.rel (%p4509_p8) target bundleno = 1200 (0x4b0), region = 48 }
  0x69   : > { %s4641_s15 = sand.u32 1, %s4405_s27   ;;  %p5309_p4 = scmp.ne.s32.totalorder %s5302_s8, 0 }
  0x6a   : > { %s3830_s20 = smul.u32 896, %s4641_s15  ;;  %s286_s21 = scalar_lea.sflag [#allocation4], %s4641_s15 }
  0x6c   : > { %s4645_s13 = scalar_lea.vmem [#allocation3], %s3830_s20 }
  0x6d   : > { %4388 = dma.done.wait (%p5309_p4), %s286_s21, 14336  }
  0x6e   : > { %4390 = vsyncadd (%p5309_p4), %s286_s21, 4294952960  ;;  %p5310_p7 = scmp.eq.s32.totalorder %s4490_s6, 0 }
  0x70   : > { %4392 = dma.done.wait (%p5310_p7), [#allocation7], 16384   ;;  %p5311_p8 = pmov %p5310_p7 }
  0x71   : > { %v4655_v0 = vld [vmem:[#allocation6 + $0x104] ss:$8 sps:$4 sm:$0xff]   ;;  %v4657_v1 = vld [vmem:[#allocation6 + $0x100] ss:$8 sps:$4 sm:$0xff]   ;;  %v4660_v2 = vld [vmem:[#allocation6 + $0x114] ss:$8 sps:$4 sm:$0xff]  }
  0x72   : > { %4394 = vsyncadd (%p5311_p8), [#allocation7], 4294950912  ;;  %1911 = vmatprep.subr.bf16.mxu0 %v4655_v0  ;;  %v4663_v3 = vld [vmem:[#allocation6 + $0x110] ss:$8 sps:$4 sm:$0xff]   ;;  %v4666_v4 = vld [vmem:[#allocation6 + $0x124] ss:$8 sps:$4 sm:$0xff]  }
  0x73   : > { %1912 = vmatpush1.bf16.msra.mxu0 %v4657_v1  ;;  %v4669_v5 = vld [vmem:[#allocation6 + $0x120] ss:$8 sps:$4 sm:$0xff]   ;;  %v4672_v6 = vld [vmem:[#allocation6 + $0x134] ss:$8 sps:$4 sm:$0xff]   ;;  %v4675_v7 = vld [vmem:[#allocation6 + $0x130] ss:$8 sps:$4 sm:$0xff]  }
  0x74   : > { %1913 = vmatprep.subr.bf16.mxu0 %v4660_v2  ;;  %v4678_v8 = vld [vmem:[#allocation6 + $0x144] ss:$8 sps:$4 sm:$0xff]   ;;  %v4681_v9 = vld [vmem:[#allocation6 + $0x140] ss:$8 sps:$4 sm:$0xff]   ;;  %v4684_v10 = vld [vmem:[#allocation6 + $0x154] ss:$8 sps:$4 sm:$0xff]  }
  0x75   : > { %v4687_v11 = vld [vmem:[#allocation6 + $0x150] ss:$8 sps:$4 sm:$0xff]   ;;  %v4689_v12 = vld [vmem:[#allocation6 + $0x164] ss:$8 sps:$4 sm:$0xff]   ;;  %v3952_v14 = vld [vmem:[#allocation6] ss:$8 sps:$4 sm:$0xff]  }
  0x76   : > { %v3950_v13 = vld [vmem:[#allocation6 + $0x4] ss:$8 sps:$4 sm:$0xff]   ;;  %v4692_v15 = vld [vmem:[#allocation6 + $0x160] ss:$8 sps:$4 sm:$0xff]   ;;  %v3956_v16 = vld [vmem:[#allocation6 + $0x14] ss:$8 sps:$4 sm:$0xff]  }
  0x77   : > { %1914 = vmatpush1.bf16.msra.mxu0 %v4663_v3  ;;  %1718 = vmatprep.subr.bf16.mxu1 %v3950_v13  ;;  %v4696_v17 = vld [vmem:[#allocation6 + $0x174] ss:$8 sps:$4 sm:$0xff]   ;;  %v3960_v18 = vld [vmem:[%s4645_s13 + $0xc] ss:$28 sps:$4 sm:$0xff]   ;;  %v3961_v19 = vld [vmem:[#allocation6 + $0x10] ss:$8 sps:$4 sm:$0xff]  }
  0x78   : > { %1915 = vmatprep.subr.bf16.mxu0 %v4666_v4  ;;  %1719 = vmatpush1.bf16.msra.mxu1 %v3952_v14  ;;  %v4699_v20 = vld [vmem:[#allocation6 + $0x170] ss:$8 sps:$4 sm:$0xff]   ;;  %v3965_v21 = vld [vmem:[#allocation6 + $0x24] ss:$8 sps:$4 sm:$0xff]   ;;  %v3967_v22 = vld [vmem:[#allocation6 + $0x20] ss:$8 sps:$4 sm:$0xff]  }
  0x79   : > { %1720 = vmatprep.subr.bf16.mxu1 %v3956_v16  ;;  %1943 = vmatprep.mubr.bf16.mxu0 %v3960_v18  ;;  %v4703_v23 = vld [vmem:[#allocation6 + $0x184] ss:$8 sps:$4 sm:$0xff]   ;;  %v3971_v24 = vld [vmem:[#allocation6 + $0x34] ss:$8 sps:$4 sm:$0xff]   ;;  %v4706_v25 = vld [vmem:[#allocation6 + $0x180] ss:$8 sps:$4 sm:$0xff]  }
  0x7a   : > { %v3975_v26 = vld [vmem:[#allocation6 + $0x30] ss:$8 sps:$4 sm:$0xff]   ;;  %v4709_v27 = vld [vmem:[#allocation6 + $0x194] ss:$8 sps:$4 sm:$0xff]   ;;  %v3980_v29 = vld [vmem:[#allocation6 + $0x44] ss:$8 sps:$4 sm:$0xff]  }
  0x7b   : > { %1916 = vmatpush1.bf16.msra.mxu0 %v4669_v5  ;;  %v4711_v28 = vld [vmem:[#allocation6 + $0x190] ss:$8 sps:$4 sm:$0xff]   ;;  %v4714_v30 = vld [vmem:[#allocation6 + $0x1a4] ss:$8 sps:$4 sm:$0xff]   ;;  %v3982_v31 = vld [vmem:[#allocation6 + $0x40] ss:$8 sps:$4 sm:$0xff]  }
  0x7c   : > { %1917 = vmatprep.subr.bf16.mxu0 %v4672_v6  ;;  %1721 = vmatpush1.bf16.msra.mxu1 %v3961_v19  ;;  %v3986_v32 = vld [vmem:[#allocation6 + $0x54] ss:$8 sps:$4 sm:$0xff]   ;;  %v4717_v33 = vld [vmem:[#allocation6 + $0x1a0] ss:$8 sps:$4 sm:$0xff]   ;;  %v3990_v35 = vld [vmem:[#allocation6 + $0x50] ss:$8 sps:$4 sm:$0xff]  }
  0x7d   : > { %1722 = vmatprep.subr.bf16.mxu1 %v3965_v21  ;;  %v4720_v34 = vld [vmem:[#allocation6 + $0x1b4] ss:$8 sps:$4 sm:$0xff]   ;;  %v3995_v36 = vld [vmem:[#allocation6 + $0x64] ss:$8 sps:$4 sm:$0xff]   ;;  %v4723_v37 = vld [vmem:[#allocation6 + $0x1b0] ss:$8 sps:$4 sm:$0xff]  }
  0x7e   : > { %v3997_v38 = vld [vmem:[#allocation6 + $0x60] ss:$8 sps:$4 sm:$0xff]   ;;  %v4727_v39 = vld [vmem:[#allocation6 + $0x1c4] ss:$8 sps:$4 sm:$0xff]   ;;  %v4001_v40 = vld [vmem:[#allocation6 + $0x74] ss:$8 sps:$4 sm:$0xff]  }
  0x7f   : > { %1918 = vmatpush1.bf16.msra.mxu0 %v4675_v7  ;;  %v4729_v41 = vld [vmem:[#allocation6 + $0x1c0] ss:$8 sps:$4 sm:$0xff]   ;;  %v4732_v42 = vld [vmem:[#allocation6 + $0x1d4] ss:$8 sps:$4 sm:$0xff]   ;;  %v4005_v43 = vld [vmem:[#allocation6 + $0x70] ss:$8 sps:$4 sm:$0xff]  }
  0x80   : > { %1919 = vmatprep.subr.bf16.mxu0 %v4678_v8  ;;  %1723 = vmatpush1.bf16.msra.mxu1 %v3967_v22  ;;  %v4010_v44 = vld [vmem:[#allocation6 + $0x84] ss:$8 sps:$4 sm:$0xff]   ;;  %v4736_v45 = vld [vmem:[#allocation6 + $0x1d0] ss:$8 sps:$4 sm:$0xff]   ;;  %v4012_v47 = vld [vmem:[#allocation6 + $0x80] ss:$8 sps:$4 sm:$0xff]  }
  0x81   : > { %1724 = vmatprep.subr.bf16.mxu1 %v3971_v24  ;;  %v4738_v46 = vld [vmem:[#allocation6 + $0x1e4] ss:$8 sps:$4 sm:$0xff]   ;;  %v4016_v48 = vld [vmem:[#allocation6 + $0x94] ss:$8 sps:$4 sm:$0xff]   ;;  %v4741_v49 = vld [vmem:[#allocation6 + $0x1e0] ss:$8 sps:$4 sm:$0xff]  }
  0x82   : > { %v4744_v50 = vld [vmem:[#allocation6 + $0x1f4] ss:$8 sps:$4 sm:$0xff]   ;;  %v4020_v51 = vld [vmem:[#allocation6 + $0x90] ss:$8 sps:$4 sm:$0xff]   ;;  %v4025_v52 = vld [vmem:[#allocation6 + $0xa4] ss:$8 sps:$4 sm:$0xff]  }
  0x83   : > { %1920 = vmatpush1.bf16.msra.mxu0 %v4681_v9  ;;  %v4747_v53 = vld [vmem:[#allocation6 + $0x1f0] ss:$8 sps:$4 sm:$0xff]   ;;  %v3964_v54 = vld [vmem:[#allocation6 + $0x204] ss:$8 sps:$4 sm:$0xff]   ;;  %v4027_v55 = vld [vmem:[#allocation6 + $0xa0] ss:$8 sps:$4 sm:$0xff]  }
  0x84   : > { %1921 = vmatprep.subr.bf16.mxu0 %v4684_v10  ;;  %1725 = vmatpush1.bf16.msra.mxu1 %v3975_v26  ;;  %v4031_v56 = vld [vmem:[#allocation6 + $0xb4] ss:$8 sps:$4 sm:$0xff]   ;;  %v3958_v57 = vld [vmem:[%s4645_s13 + $0x8] ss:$28 sps:$4 sm:$0xff]   ;;  %v4035_v61 = vld [vmem:[#allocation6 + $0xb0] ss:$8 sps:$4 sm:$0xff]  }
  0x85   : > { %1726 = vmatprep.subr.bf16.mxu1 %v3980_v29  ;;  %v3962_v58 = vld [vmem:[#allocation6 + $0x200] ss:$8 sps:$4 sm:$0xff]   ;;  %v3970_v60 = vld [vmem:[#allocation6 + $0x214] ss:$8 sps:$4 sm:$0xff]   ;;  %v4040_v62 = vld [vmem:[#allocation6 + $0xc4] ss:$8 sps:$4 sm:$0xff]  }
  0x86   : > { %v3973_v59 = vld [vmem:[%s4645_s13 + $0x44] ss:$28 sps:$4 sm:$0xff]   ;;  %v3968_v63 = vld [vmem:[#allocation6 + $0x210] ss:$8 sps:$4 sm:$0xff]   ;;  %v4046_v16 = vld [vmem:[#allocation6 + $0xd4] ss:$8 sps:$4 sm:$0xff]  }
  0x87   : > { %1922 = vmatpush1.bf16.msra.mxu0 %v4687_v11  ;;  %v3979_v13 = vld [vmem:[#allocation6 + $0x224] ss:$8 sps:$4 sm:$0xff]   ;;  %v4042_v14 = vld [vmem:[#allocation6 + $0xc0] ss:$8 sps:$4 sm:$0xff]   ;;  %v3985_v21 = vld [vmem:[#allocation6 + $0x234] ss:$8 sps:$4 sm:$0xff]  }
  0x88   : > { %1923 = vmatprep.subr.bf16.mxu0 %v4689_v12  ;;  %1727 = vmatpush1.bf16.msra.mxu1 %v3982_v31  ;;  %v3976_v18 = vld [vmem:[%s4645_s13 + $0x40] ss:$28 sps:$4 sm:$0xff]   ;;  %v4050_v24 = vld [vmem:[#allocation6 + $0xd0] ss:$8 sps:$4 sm:$0xff]   ;;  %v4055_v26 = vld [vmem:[#allocation6 + $0xe4] ss:$8 sps:$4 sm:$0xff]  }
  0x89   : > { %1728 = vmatprep.subr.bf16.mxu1 %v3986_v32  ;;  %v3977_v19 = vld [vmem:[#allocation6 + $0x220] ss:$8 sps:$4 sm:$0xff]   ;;  %v3988_v22 = vld [vmem:[%s4645_s13 + $0x7c] ss:$28 sps:$4 sm:$0xff]   ;;  %v3994_v32 = vld [vmem:[#allocation6 + $0x244] ss:$8 sps:$4 sm:$0xff]  }
  0x8a   : > { %v4072_v29 = vld [vmem:[%s4645_s13 + $0x4] ss:$28 sps:$4 sm:$0xff]   ;;  %v3983_v31 = vld [vmem:[#allocation6 + $0x230] ss:$8 sps:$4 sm:$0xff]   ;;  %s2986_s18 = sld [smem:[#allocation2]]  ;;  %s3116_s22 = sshll.u32 %s4641_s15, 1 }
  0x8b   : > { %1924 = vmatpush1.bf16.msra.mxu0 %v4692_v15  ;;  %1750 = vmatprep.mubr.bf16.mxu1 %v4072_v29  ;;  %v4103_v29 = vld [vmem:[%s4645_s13 + $0x11c] ss:$28 sps:$4 sm:$0xff]   ;;  %s3359_s11 = sshll.u32 %s4490_s6, 5  ;;  %s327_s25 = scalar_lea.vmem [#allocation9], %s3116_s22 }
  0x8c   : > { %1925 = vmatprep.subr.bf16.mxu0 %v4696_v17  ;;  %1729 = vmatpush1.bf16.msra.mxu1 %v3990_v35  ;;  %v4057_v35 = vld [vmem:[#allocation6 + $0xe0] ss:$8 sps:$4 sm:$0xff]   ;;  %s3016_s14 = sshll.u32 %s327_s25, 4  ;;  %s3003_s8 = scalar_lea.sflag [#allocation5], %s4641_s15  ;;  %s5249_s14 = int_to_ptr.vmem [resolvable:$true] %s3016_s14 }
  0x8d   : > { %1730 = vmatprep.subr.bf16.mxu1 %v3995_v36  ;;  %v4061_v36 = vld [vmem:[#allocation6 + $0xf4] ss:$8 sps:$4 sm:$0xff]   ;;  %s4343_s10 = scalar_lea.vmem %s5249_s14, 32  ;;  %p5336_p0 = scmp.ne.s32.totalorder %s5307_s17, 0 }
  0x8e   : > { %p4344_p11 = scmp.ne.s32.totalorder %s5249_s14, %s4343_s10  ;;  %s4425_s6 = smov [#allocation9]  }
  0x8f   : > { %1926 = vmatpush1.bf16.msra.mxu0 %v4699_v20  ;;  %s4347_s19 = sshll.u32 %s4425_s6, 4  ;;  %s4348_s19 = int_to_ptr.vmem [resolvable:$false] %s4347_s19 }
  0x90   : > { %1927 = vmatprep.subr.bf16.mxu0 %v4703_v23  ;;  %1731 = vmatpush1.bf16.msra.mxu1 %v3997_v38  ;;  %v3991_v38 = vld [vmem:[%s4645_s13 + $0x78] ss:$28 sps:$4 sm:$0xff]   ;;  %p4345_p1 = pnand %p4344_p11, %p5336_p0  ;;  %s4349_s12 = scalar_lea.vmem %s4348_s19, 64 }
  0x91   : > { %1732 = vmatprep.subr.bf16.mxu1 %v4001_v40  ;;  %v3992_v40 = vld [vmem:[#allocation6 + $0x240] ss:$8 sps:$4 sm:$0xff]   ;;  %p4350_p5 = scmp.lt.s32.totalorder %s5249_s14, %s4348_s19  ;;  %p4351_p9 = scmp.lt.s32.totalorder %s4349_s12, %s4343_s10 }
  0x92   : > { %p4346_p3 = pneg %p4345_p1 }
  0x93   : > { %1928 = vmatpush1.bf16.msra.mxu0 %v4706_v25  ;;  %p4352_p12 = por %p4351_p9, %p4350_p5 }
  0x94   : > { %1929 = vmatprep.subr.bf16.mxu0 %v4709_v27  ;;  %1733 = vmatpush1.bf16.msra.mxu1 %v4005_v43  ;;  %v4000_v43 = vld [vmem:[#allocation6 + $0x254] ss:$8 sps:$4 sm:$0xff]  }
  0x95   : > { %1734 = vmatprep.subr.bf16.mxu1 %v4010_v44  ;;  %v4003_v44 = vld [vmem:[%s4645_s13 + $0xb4] ss:$28 sps:$4 sm:$0xff]   ;;  %p4353_p2 = pnand %p4352_p12, %p4346_p3 }
  0x97   : > { %1930 = vmatpush1.bf16.msra.mxu0 %v4711_v28 }
  0x98   : > { %1931 = vmatprep.subr.bf16.mxu0 %v4714_v30  ;;  %1735 = vmatpush1.bf16.msra.mxu1 %v4012_v47  ;;  %v4065_v47 = vld [vmem:[#allocation6 + $0xf0] ss:$8 sps:$4 sm:$0xff]  }
  0x99   : > { %1736 = vmatprep.subr.bf16.mxu1 %v4016_v48  ;;  %v3998_v48 = vld [vmem:[#allocation6 + $0x250] ss:$8 sps:$4 sm:$0xff]  }
  0x9b   : > { %1932 = vmatpush1.bf16.msra.mxu0 %v4717_v33 }
  0x9c   : > { %1933 = vmatprep.subr.bf16.mxu0 %v4720_v34  ;;  %1737 = vmatpush1.bf16.msra.mxu1 %v4020_v51  ;;  %v4009_v51 = vld [vmem:[#allocation6 + $0x264] ss:$8 sps:$4 sm:$0xff]  }
  0x9d   : > { %1738 = vmatprep.subr.bf16.mxu1 %v4025_v52  ;;  %v4070_v52 = vld [vmem:[%s4645_s13] ss:$28 sps:$4 sm:$0xff]  }
  0x9f   : > { %1934 = vmatpush1.bf16.msra.mxu0 %v4723_v37 }
  0xa0   : > { %1935 = vmatprep.subr.bf16.mxu0 %v4727_v39  ;;  %1739 = vmatpush1.bf16.msra.mxu1 %v4027_v55  ;;  %v4006_v55 = vld [vmem:[%s4645_s13 + $0xb0] ss:$28 sps:$4 sm:$0xff]  }
  0xa1   : > { %1740 = vmatprep.subr.bf16.mxu1 %v4031_v56  ;;  %v4007_v56 = vld [vmem:[#allocation6 + $0x260] ss:$8 sps:$4 sm:$0xff]  }
  0xa3   : > { %1936 = vmatpush1.bf16.msra.mxu0 %v4729_v41 }
  0xa4   : > { %1937 = vmatprep.subr.bf16.mxu0 %v4732_v42  ;;  %1741 = vmatpush1.bf16.msra.mxu1 %v4035_v61  ;;  %v4085_v61 = vld [vmem:[%s4645_s13 + $0x74] ss:$28 sps:$4 sm:$0xff]  }
  0xa5   : > { %1742 = vmatprep.subr.bf16.mxu1 %v4040_v62  ;;  %v4021_v62 = vld [vmem:[%s4645_s13 + $0xe8] ss:$28 sps:$4 sm:$0xff]  }
  0xa7   : > { %1938 = vmatpush1.bf16.msra.mxu0 %v4736_v45 }
  0xa8   : > { %1939 = vmatprep.subr.bf16.mxu0 %v4738_v46  ;;  %1743 = vmatpush1.bf16.msra.mxu1 %v4042_v14  ;;  %v4091_v14 = vld [vmem:[%s4645_s13 + $0xac] ss:$28 sps:$4 sm:$0xff]  }
  0xa9   : > { %1744 = vmatprep.subr.bf16.mxu1 %v4046_v16  ;;  %v4036_v16 = vld [vmem:[%s4645_s13 + $0x120] ss:$28 sps:$4 sm:$0xff]  }
  0xab   : > { %1940 = vmatpush1.bf16.msra.mxu0 %v4741_v49 }
  0xac   : > { %1941 = vmatprep.subr.bf16.mxu0 %v4744_v50  ;;  %1745 = vmatpush1.bf16.msra.mxu1 %v4050_v24  ;;  %v4052_v24 = vld [vmem:[#allocation6 + $0x2c0] ss:$8 sps:$4 sm:$0xff]  }
  0xad   : > { %1746 = vmatprep.subr.bf16.mxu1 %v4055_v26  ;;  %v4058_v26 = vld [vmem:[#allocation6 + $0x2d0] ss:$8 sps:$4 sm:$0xff]  }
  0xaf   : > { %1942 = vmatpush1.bf16.msra.mxu0 %v4747_v53 }
  0xb0   : > { %2104 = vmatprep.subr.bf16.mxu0 %v3964_v54  ;;  %1747 = vmatpush1.bf16.msra.mxu1 %v4057_v35  ;;  %v4079_v54 = vld [vmem:[%s4645_s13 + $0x3c] ss:$28 sps:$4 sm:$0xff]  }
  0xb1   : > { %1748 = vmatprep.subr.bf16.mxu1 %v4061_v36  ;;  %v4073_v35 = vld [vmem:[#allocation6 + $0x2f0] ss:$8 sps:$4 sm:$0xff]   ;;  %v4129_v36 = vld [vmem:[#allocation6 + $0x304] ss:$8 sps:$4 sm:$0xff]  }
  0xb2   : > { %1944 = vmatmul.mubr.bf16.vlgmr.msra.gmra.mrb[0].mxu0 %v3958_v57  ;;  %v4018_v57 = vld [vmem:[%s4645_s13 + $0xec] ss:$28 sps:$4 sm:$0xff]  }
  0xb3   : > { %2105 = vmatpush1.bf16.msra.mxu0 %v3962_v58  ;;  %1953 = vmatprep.mubr.bf16.mxu0 %v3973_v59  ;;  %v4015_v58 = vld [vmem:[#allocation6 + $0x274] ss:$8 sps:$4 sm:$0xff]   ;;  %v4013_v59 = vld [vmem:[#allocation6 + $0x270] ss:$8 sps:$4 sm:$0xff]  }
  0xb4   : > { %2106 = vmatprep.subr.bf16.mxu0 %v3970_v60  ;;  %1749 = vmatpush1.bf16.msra.mxu1 %v4065_v47  ;;  %v4081_v60 = vld [vmem:[%s4645_s13 + $0x38] ss:$28 sps:$4 sm:$0xff]   ;;  %v4159_v47 = vld [vmem:[#allocation6 + $0x324] ss:$8 sps:$4 sm:$0xff]  }
  0xb5   : > { %3540 = vmatprep.subr.bf16.mxu1 %v4655_v0  ;;  %v4024_v0 = vld [vmem:[#allocation6 + $0x284] ss:$8 sps:$4 sm:$0xff]  }
  0xb7   : > { %2107 = vmatpush1.bf16.msra.mxu0 %v3968_v63  ;;  %1751 = vmatmul.mubr.bf16.vlgmr.msra.gmra.mrb[0].mxu1 %v4070_v52  ;;  %v4022_v63 = vld [vmem:[#allocation6 + $0x280] ss:$8 sps:$4 sm:$0xff]  }
  0xb8   : > { %2108 = vmatprep.subr.bf16.mxu0 %v3979_v13  ;;  %1760 = vmatprep.mubr.bf16.mxu1 %v4079_v54  ;;  %v4028_v13 = vld [vmem:[#allocation6 + $0x290] ss:$8 sps:$4 sm:$0xff]   ;;  %v4121_v52 = vld [vmem:[%s4645_s13 + $0x1c4] ss:$28 sps:$4 sm:$0xff]  }
  0xb9   : > { %3556 = vmatpush1.bf16.msra.mxu1 %v4657_v1  ;;  %v4033_v1 = vld [vmem:[%s4645_s13 + $0x124] ss:$28 sps:$4 sm:$0xff]   ;;  %v4169_v54 = vld [vmem:[#allocation6 + $0x330] ss:$8 sps:$4 sm:$0xff]  }
  0xba   : > { %1954 = vmatmul.mubr.bf16.gmra.mrb[4].mxu0 %v3976_v18  ;;  %3541 = vmatprep.subr.bf16.mxu1 %v4660_v2  ;;  %v4030_v2 = vld [vmem:[#allocation6 + $0x294] ss:$8 sps:$4 sm:$0xff]   ;;  %v4037_v18 = vld [vmem:[#allocation6 + $0x2a0] ss:$8 sps:$4 sm:$0xff]  }
  0xbb   : > { %2109 = vmatpush1.bf16.msra.mxu0 %v3977_v19  ;;  %1963 = vmatprep.mubr.bf16.mxu0 %v3988_v22  ;;  %v4043_v19 = vld [vmem:[#allocation6 + $0x2b0] ss:$8 sps:$4 sm:$0xff]  }
  0xbc   : > { %2110 = vmatprep.subr.bf16.mxu0 %v3985_v21  ;;  %v4097_v21 = vld [vmem:[%s4645_s13 + $0xe4] ss:$28 sps:$4 sm:$0xff]   ;;  %v4051_v22 = vld [vmem:[%s4645_s13 + $0x158] ss:$28 sps:$4 sm:$0xff]  }
  0xbd   : > { %3557 = vmatpush1.bf16.msra.mxu1 %v4663_v3  ;;  %v4039_v3 = vld [vmem:[#allocation6 + $0x2a4] ss:$8 sps:$4 sm:$0xff]  }
  0xbe   : > { %3542 = vmatprep.subr.bf16.mxu1 %v4666_v4  ;;  %v4087_v4 = vld [vmem:[%s4645_s13 + $0x70] ss:$28 sps:$4 sm:$0xff]  }
  0xbf   : > { %2111 = vmatpush1.bf16.msra.mxu0 %v3983_v31  ;;  %1761 = vmatmul.mubr.bf16.gmra.mrb[4].mxu1 %v4081_v60  ;;  %v4066_v31 = vld [vmem:[%s4645_s13 + $0x190] ss:$28 sps:$4 sm:$0xff]   ;;  %v4195_v60 = vld [vmem:[#allocation6 + $0x374] ss:$8 sps:$4 sm:$0xff]  }
  0xc0   : > { %2112 = vmatprep.subr.bf16.mxu0 %v3994_v32  ;;  %1770 = vmatprep.mubr.bf16.mxu1 %v4085_v61  ;;  %v4067_v32 = vld [vmem:[#allocation6 + $0x2e0] ss:$8 sps:$4 sm:$0xff]   ;;  %v4193_v61 = vld [vmem:[#allocation6 + $0x370] ss:$8 sps:$4 sm:$0xff]  }
  0xc1   : > { %3558 = vmatpush1.bf16.msra.mxu1 %v4669_v5  ;;  %v4048_v5 = vld [vmem:[%s4645_s13 + $0x15c] ss:$28 sps:$4 sm:$0xff]  }
  0xc2   : > { %1964 = vmatmul.mubr.bf16.gmra.mrb[8].mxu0 %v3991_v38  ;;  %3543 = vmatprep.subr.bf16.mxu1 %v4672_v6  ;;  %v4045_v6 = vld [vmem:[#allocation6 + $0x2b4] ss:$8 sps:$4 sm:$0xff]   ;;  %v4076_v38 = vld [vmem:[%s4645_s13 + $0x10] ss:$28 sps:$4 sm:$0xff]  }
  0xc3   : > { %2113 = vmatpush1.bf16.msra.mxu0 %v3992_v40  ;;  %1973 = vmatprep.mubr.bf16.mxu0 %v4003_v44  ;;  %v4127_v40 = vld [vmem:[#allocation6 + $0x300] ss:$8 sps:$4 sm:$0xff]  }
  0xc4   : > { %2114 = vmatprep.subr.bf16.mxu0 %v4000_v43  ;;  %v4111_v43 = vld [vmem:[%s4645_s13 + $0x150] ss:$28 sps:$4 sm:$0xff]   ;;  %v4084_v44 = vld [vmem:[%s4645_s13 + $0x48] ss:$28 sps:$4 sm:$0xff]  }
  0xc5   : > { %3559 = vmatpush1.bf16.msra.mxu1 %v4675_v7  ;;  %v4054_v7 = vld [vmem:[#allocation6 + $0x2c4] ss:$8 sps:$4 sm:$0xff]  }
  0xc6   : > { %3544 = vmatprep.subr.bf16.mxu1 %v4678_v8  ;;  %v4093_v8 = vld [vmem:[%s4645_s13 + $0xa8] ss:$28 sps:$4 sm:$0xff]  }
  0xc7   : > { %2115 = vmatpush1.bf16.msra.mxu0 %v3998_v48  ;;  %1771 = vmatmul.mubr.bf16.gmra.mrb[8].mxu1 %v4087_v4  ;;  %v4088_v48 = vld [vmem:[%s4645_s13 + $0x84] ss:$28 sps:$4 sm:$0xff]  }
  0xc8   : > { %2116 = vmatprep.subr.bf16.mxu0 %v4009_v51  ;;  %1780 = vmatprep.mubr.bf16.mxu1 %v4091_v14  ;;  %v4157_v51 = vld [vmem:[#allocation6 + $0x320] ss:$8 sps:$4 sm:$0xff]  }
  0xc9   : > { %3560 = vmatpush1.bf16.msra.mxu1 %v4681_v9  ;;  %v4063_v9 = vld [vmem:[%s4645_s13 + $0x194] ss:$28 sps:$4 sm:$0xff]   ;;  %v4151_v4 = vld [vmem:[%s4645_s13 + $0x2a4] ss:$28 sps:$4 sm:$0xff]  }
  0xca   : > { %1974 = vmatmul.mubr.bf16.gmra.mrb[12].mxu0 %v4006_v55  ;;  %3545 = vmatprep.subr.bf16.mxu1 %v4684_v10  ;;  %v4060_v10 = vld [vmem:[#allocation6 + $0x2d4] ss:$8 sps:$4 sm:$0xff]  }
  0xcb   : > { %2117 = vmatpush1.bf16.msra.mxu0 %v4007_v56  ;;  %1983 = vmatprep.mubr.bf16.mxu0 %v4018_v57  ;;  %v4094_v55 = vld [vmem:[%s4645_s13 + $0xbc] ss:$28 sps:$4 sm:$0xff]   ;;  %v4175_v56 = vld [vmem:[#allocation6 + $0x340] ss:$8 sps:$4 sm:$0xff]  }
  0xcc   : > { %2118 = vmatprep.subr.bf16.mxu0 %v4015_v58  ;;  %v4130_v57 = vld [vmem:[%s4645_s13 + $0x1fc] ss:$28 sps:$4 sm:$0xff]  }
  0xcd   : > { %3561 = vmatpush1.bf16.msra.mxu1 %v4687_v11  ;;  %v4069_v11 = vld [vmem:[#allocation6 + $0x2e4] ss:$8 sps:$4 sm:$0xff]   ;;  %v4181_v58 = vld [vmem:[#allocation6 + $0x350] ss:$8 sps:$4 sm:$0xff]   ;;  %v4114_v14 = vld [vmem:[%s4645_s13 + $0x160] ss:$28 sps:$4 sm:$0xff]  }
  0xce   : > { %3546 = vmatprep.subr.bf16.mxu1 %v4689_v12  ;;  %v4099_v12 = vld [vmem:[%s4645_s13 + $0xe0] ss:$28 sps:$4 sm:$0xff]  }
  0xcf   : > { %2119 = vmatpush1.bf16.msra.mxu0 %v4013_v59  ;;  %1781 = vmatmul.mubr.bf16.gmra.mrb[12].mxu1 %v4093_v8  ;;  %v4100_v59 = vld [vmem:[%s4645_s13 + $0xf4] ss:$28 sps:$4 sm:$0xff]  }
  0xd0   : > { %2120 = vmatprep.subr.bf16.mxu0 %v4024_v0  ;;  %1790 = vmatprep.mubr.bf16.mxu1 %v4097_v21  ;;  %v4187_v0 = vld [vmem:[#allocation6 + $0x360] ss:$8 sps:$4 sm:$0xff]   ;;  %v4166_v8 = vld [vmem:[%s4645_s13 + $0x314] ss:$28 sps:$4 sm:$0xff]  }
  0xd1   : > { %3562 = vmatpush1.bf16.msra.mxu1 %v4692_v15  ;;  %v4078_v15 = vld [vmem:[%s4645_s13 + $0x14] ss:$28 sps:$4 sm:$0xff]  }
  0xd2   : > { %1984 = vmatmul.mubr.bf16.gmra.mrb[16].mxu0 %v4021_v62  ;;  %3547 = vmatprep.subr.bf16.mxu1 %v4696_v17  ;;  %v4075_v17 = vld [vmem:[#allocation6 + $0x2f4] ss:$8 sps:$4 sm:$0xff]   ;;  %v4102_v62 = vld [vmem:[%s4645_s13 + $0xf0] ss:$28 sps:$4 sm:$0xff]  }
  0xd3   : > { %2121 = vmatpush1.bf16.msra.mxu0 %v4022_v63  ;;  %1993 = vmatprep.mubr.bf16.mxu0 %v4033_v1  ;;  %v4138_v63 = vld [vmem:[%s4645_s13 + $0x230] ss:$28 sps:$4 sm:$0xff]  }
  0xd4   : > { %2122 = vmatprep.subr.bf16.mxu0 %v4030_v2  ;;  %v4145_v1 = vld [vmem:[%s4645_s13 + $0x26c] ss:$28 sps:$4 sm:$0xff]  }
  0xd5   : > { %3563 = vmatpush1.bf16.msra.mxu1 %v4699_v20  ;;  %v4105_v20 = vld [vmem:[%s4645_s13 + $0x118] ss:$28 sps:$4 sm:$0xff]   ;;  %v4108_v2 = vld [vmem:[%s4645_s13 + $0x128] ss:$28 sps:$4 sm:$0xff]   ;;  %v4126_v21 = vld [vmem:[%s4645_s13 + $0x1d0] ss:$28 sps:$4 sm:$0xff]  }
  0xd6   : > { %3548 = vmatprep.subr.bf16.mxu1 %v4703_v23  ;;  %v4109_v23 = vld [vmem:[%s4645_s13 + $0x154] ss:$28 sps:$4 sm:$0xff]  }
  0xd7   : > { %2123 = vmatpush1.bf16.msra.mxu0 %v4028_v13  ;;  %1791 = vmatmul.mubr.bf16.gmra.mrb[16].mxu1 %v4099_v12  ;;  %v4112_v13 = vld [vmem:[%s4645_s13 + $0x164] ss:$28 sps:$4 sm:$0xff]   ;;  %v4192_v12 = vld [vmem:[%s4645_s13 + $0x1cc] ss:$28 sps:$4 sm:$0xff]  }
  0xd8   : > { %2124 = vmatprep.subr.bf16.mxu0 %v4039_v3  ;;  %1800 = vmatprep.mubr.bf16.mxu1 %v4103_v29  ;;  %v4147_v3 = vld [vmem:[%s4645_s13 + $0x268] ss:$28 sps:$4 sm:$0xff]   ;;  %v4141_v29 = vld [vmem:[%s4645_s13 + $0x240] ss:$28 sps:$4 sm:$0xff]  }
  0xd9   : > { %3564 = vmatpush1.bf16.msra.mxu1 %v4706_v25  ;;  %v4082_v25 = vld [vmem:[%s4645_s13 + $0x4c] ss:$28 sps:$4 sm:$0xff]  }
  0xda   : > { %1994 = vmatmul.mubr.bf16.gmra.mrb[20].mxu0 %v4036_v16  ;;  %3549 = vmatprep.subr.bf16.mxu1 %v4709_v27  ;;  %v4144_v27 = vld [vmem:[#allocation6 + $0x314] ss:$8 sps:$4 sm:$0xff]  }
  0xdb   : > { %2125 = vmatpush1.bf16.msra.mxu0 %v4037_v18  ;;  %2003 = vmatprep.mubr.bf16.mxu0 %v4048_v5  ;;  %v4118_v16 = vld [vmem:[%s4645_s13 + $0x19c] ss:$28 sps:$4 sm:$0xff]  }
  0xdc   : > { %2126 = vmatprep.subr.bf16.mxu0 %v4045_v6  ;;  %v4153_v18 = vld [vmem:[%s4645_s13 + $0x2a0] ss:$28 sps:$4 sm:$0xff]   ;;  %v4120_v6 = vld [vmem:[%s4645_s13 + $0x198] ss:$28 sps:$4 sm:$0xff]  }
  0xdd   : > { %3565 = vmatpush1.bf16.msra.mxu1 %v4711_v28  ;;  %v4115_v28 = vld [vmem:[%s4645_s13 + $0x18c] ss:$28 sps:$4 sm:$0xff]   ;;  %v4160_v5 = vld [vmem:[%s4645_s13 + $0x2dc] ss:$28 sps:$4 sm:$0xff]  }
  0xde   : > { %3550 = vmatprep.subr.bf16.mxu1 %v4714_v30  ;;  %v4142_v30 = vld [vmem:[#allocation6 + $0x310] ss:$8 sps:$4 sm:$0xff]  }
  0xdf   : > { %2127 = vmatpush1.bf16.msra.mxu0 %v4043_v19  ;;  %1801 = vmatmul.mubr.bf16.gmra.mrb[20].mxu1 %v4105_v20  ;;  %v4124_v19 = vld [vmem:[%s4645_s13 + $0x1d4] ss:$28 sps:$4 sm:$0xff]   ;;  %v4199_v20 = vld [vmem:[%s4645_s13 + $0x200] ss:$28 sps:$4 sm:$0xff]  }
  0xe0   : > { %2128 = vmatprep.subr.bf16.mxu0 %v4054_v7  ;;  %1810 = vmatprep.mubr.bf16.mxu1 %v4109_v23  ;;  %v4162_v7 = vld [vmem:[%s4645_s13 + $0x2d8] ss:$28 sps:$4 sm:$0xff]  }
  0xe1   : > { %3566 = vmatpush1.bf16.msra.mxu1 %v4717_v33  ;;  %v4171_v33 = vld [vmem:[#allocation6 + $0x334] ss:$8 sps:$4 sm:$0xff]  }
  0xe2   : > { %2004 = vmatmul.mubr.bf16.gmra.mrb[24].mxu0 %v4051_v22  ;;  %3551 = vmatprep.subr.bf16.mxu1 %v4720_v34  ;;  %v4117_v34 = vld [vmem:[%s4645_s13 + $0x188] ss:$28 sps:$4 sm:$0xff]   ;;  %v4201_v23 = vld [vmem:[%s4645_s13 + $0x23c] ss:$28 sps:$4 sm:$0xff]  }
  0xe3   : > { %2129 = vmatpush1.bf16.msra.mxu0 %v4052_v24  ;;  %2013 = vmatprep.mubr.bf16.mxu0 %v4063_v9  ;;  %v4133_v22 = vld [vmem:[%s4645_s13 + $0x20c] ss:$28 sps:$4 sm:$0xff]  }
  0xe4   : > { %2130 = vmatprep.subr.bf16.mxu0 %v4060_v10  ;;  %v4168_v24 = vld [vmem:[%s4645_s13 + $0x310] ss:$28 sps:$4 sm:$0xff]   ;;  %v4135_v10 = vld [vmem:[%s4645_s13 + $0x208] ss:$28 sps:$4 sm:$0xff]  }
  0xe5   : > { %3567 = vmatpush1.bf16.msra.mxu1 %v4723_v37  ;;  %v4177_v37 = vld [vmem:[#allocation6 + $0x344] ss:$8 sps:$4 sm:$0xff]  }
  0xe6   : > { %3552 = vmatprep.subr.bf16.mxu1 %v4727_v39  ;;  %v4090_v39 = vld [vmem:[%s4645_s13 + $0x80] ss:$28 sps:$4 sm:$0xff]   ;;  %v4178_v9 = vld [vmem:[%s4645_s13 + $0x34c] ss:$28 sps:$4 sm:$0xff]  }
  0xe7   : > { %2131 = vmatpush1.bf16.msra.mxu0 %v4058_v26  ;;  %1811 = vmatmul.mubr.bf16.gmra.mrb[24].mxu1 %v4111_v43  ;;  %v4139_v26 = vld [vmem:[%s4645_s13 + $0x244] ss:$28 sps:$4 sm:$0xff]  }
  0xe8   : > { %2132 = vmatprep.subr.bf16.mxu0 %v4069_v11  ;;  %1820 = vmatprep.mubr.bf16.mxu1 %v4115_v28  ;;  %v4180_v11 = vld [vmem:[%s4645_s13 + $0x348] ss:$28 sps:$4 sm:$0xff]   ;;  %v4207_v28 = vld [vmem:[%s4645_s13 + $0x270] ss:$28 sps:$4 sm:$0xff]  }
  0xe9   : > { %3568 = vmatpush1.bf16.msra.mxu1 %v4729_v41  ;;  %v4183_v41 = vld [vmem:[#allocation6 + $0x354] ss:$8 sps:$4 sm:$0xff]   ;;  %v4172_v43 = vld [vmem:[%s4645_s13 + $0x324] ss:$28 sps:$4 sm:$0xff]  }
  0xea   : > { %2014 = vmatmul.mubr.bf16.gmra.mrb[28].mxu0 %v4066_v31  ;;  %3553 = vmatprep.subr.bf16.mxu1 %v4732_v42  ;;  %v4123_v42 = vld [vmem:[%s4645_s13 + $0x1c0] ss:$28 sps:$4 sm:$0xff]  }
  0xeb   : > { %2133 = vmatpush1.bf16.msra.mxu0 %v4067_v32  ;;  %2136 = vmatprep.mubr.bf16.mxu0 %v4078_v15  ;;  %v4148_v31 = vld [vmem:[%s4645_s13 + $0x27c] ss:$28 sps:$4 sm:$0xff]   ;;  %v4190_v32 = vld [vmem:[%s4645_s13 + $0x1c8] ss:$28 sps:$4 sm:$0xff]  }
  0xec   : > { %2134 = vmatprep.subr.bf16.mxu0 %v4075_v17  ;;  %v4197_v15 = vld [vmem:[%s4645_s13 + $0x204] ss:$28 sps:$4 sm:$0xff]   ;;  %v4150_v17 = vld [vmem:[%s4645_s13 + $0x278] ss:$28 sps:$4 sm:$0xff]  }
  0xed   : > { %3569 = vmatpush1.bf16.msra.mxu1 %v4736_v45  ;;  %v4189_v45 = vld [vmem:[#allocation6 + $0x364] ss:$8 sps:$4 sm:$0xff]  }
  0xee   : > { %3554 = vmatprep.subr.bf16.mxu1 %v4738_v46  ;;  %v4096_v46 = vld [vmem:[%s4645_s13 + $0xb8] ss:$28 sps:$4 sm:$0xff]  }
  0xef   : > { %2135 = vmatpush1.bf16.msra.mxu0 %v4073_v35  ;;  %1821 = vmatmul.mubr.bf16.gmra.mrb[28].mxu1 %v4117_v34  ;;  %v4154_v35 = vld [vmem:[%s4645_s13 + $0x2b4] ss:$28 sps:$4 sm:$0xff]   ;;  %v4233_v34 = vld [vmem:[#allocation8 + $0x40] sm:$0xff]  }
  0xf0   : > { %2297 = vmatprep.subr.bf16.mxu0 %v4129_v36  ;;  %1830 = vmatprep.mubr.bf16.mxu1 %v4121_v52  ;;  %v4156_v36 = vld [vmem:[%s4645_s13 + $0x2b0] ss:$28 sps:$4 sm:$0xff]   ;;  %v4234_v52 = vld [vmem:[#allocation8] sm:$0xff]  }
  0xf1   : > { %3570 = vmatpush1.bf16.msra.mxu1 %v4741_v49  ;;  %v4132_v49 = vld [vmem:[%s4645_s13 + $0x1f8] ss:$28 sps:$4 sm:$0xff]  }
  0xf2   : > { %2137 = vmatmul.mubr.bf16.vlgmr.msra.gmra.mrb[0].mxu0 %v4076_v38  ;;  %3555 = vmatprep.subr.bf16.mxu1 %v4744_v50  ;;  %v4136_v50 = vld [vmem:[%s4645_s13 + $0x234] ss:$28 sps:$4 sm:$0xff]   ;;  %v4163_v38 = vld [vmem:[%s4645_s13 + $0x2ec] ss:$28 sps:$4 sm:$0xff]  }
  0xf3   : > { %2146 = vmatprep.mubr.bf16.mxu0 %v4082_v25  ;;  %2298 = vmatpush1.bf16.msra.mxu0 %v4127_v40  ;;  %v4203_v25 = vld [vmem:[%s4645_s13 + $0x238] ss:$28 sps:$4 sm:$0xff]  }
  0xf4   : > { %2299 = vmatprep.subr.bf16.mxu0 %v4144_v27  ;;  %v4205_v40 = vld [vmem:[%s4645_s13 + $0x274] ss:$28 sps:$4 sm:$0xff]   ;;  %v4165_v27 = vld [vmem:[%s4645_s13 + $0x2e8] ss:$28 sps:$4 sm:$0xff]  }
  0xf5   : > { %3571 = vmatpush1.bf16.msra.mxu1 %v4747_v53  ;;  %v4106_v53 = vld [vmem:[%s4645_s13 + $0x12c] ss:$28 sps:$4 sm:$0xff]  }
  0xf6   : > { %3362 = vmatprep.subr.bf16.mxu1 %v4233_v34 }
  0xf7   : > { %2300 = vmatpush1.bf16.msra.mxu0 %v4142_v30  ;;  %1831 = vmatmul.mubr.bf16.gmra.mrb[32].mxu1 %v4123_v42  ;;  %v4209_v30 = vld [vmem:[%s4645_s13 + $0x2ac] ss:$28 sps:$4 sm:$0xff]   ;;  %v4237_v42 = vld [vmem:[#allocation8 + $0x50] sm:$0xff]  }
  0xf8   : > { %2301 = vmatprep.subr.bf16.mxu0 %v4159_v47  ;;  %1840 = vmatprep.mubr.bf16.mxu1 %v4130_v57  ;;  %v4184_v47 = vld [vmem:[%s4645_s13 + $0x35c] ss:$28 sps:$4 sm:$0xff]   ;;  %v4238_v57 = vld [vmem:[#allocation8 + $0x10] sm:$0xff]  }
  0xfa   : > { %2147 = vmatmul.mubr.bf16.gmra.mrb[4].mxu0 %v4084_v44  ;;  %v4174_v44 = vld [vmem:[%s4645_s13 + $0x320] ss:$28 sps:$4 sm:$0xff]  }
  0xfb   : > { %2156 = vmatprep.mubr.bf16.mxu0 %v4088_v48  ;;  %2302 = vmatpush1.bf16.msra.mxu0 %v4157_v51  ;;  %v4211_v48 = vld [vmem:[%s4645_s13 + $0x2a8] ss:$28 sps:$4 sm:$0xff]  }
  0xfc   : > { %2303 = vmatprep.subr.bf16.mxu0 %v4171_v33  ;;  %v4213_v51 = vld [vmem:[%s4645_s13 + $0x2e4] ss:$28 sps:$4 sm:$0xff]   ;;  %v4186_v33 = vld [vmem:[%s4645_s13 + $0x358] ss:$28 sps:$4 sm:$0xff]  }
  0xff   : > { %2304 = vmatpush1.bf16.msra.mxu0 %v4169_v54  ;;  %1841 = vmatmul.mubr.bf16.gmra.mrb[36].mxu1 %v4132_v49  ;;  %v4424_v54 = vmov 0   ;;  %v4204_v49 = vld [vmem:[%s4645_s13 + $0x88] ss:$28 sps:$4 sm:$0xff]  }
 0x100   : > { %2305 = vmatprep.subr.bf16.mxu0 %v4177_v37  ;;  %1850 = vmatprep.mubr.bf16.mxu1 %v4136_v50  ;;  %v4215_v37 = vld [vmem:[%s4645_s13 + $0x2e0] ss:$28 sps:$4 sm:$0xff]  }
 0x101   : > { %v4208_v50 = vld [vmem:[%s4645_s13 + $0xc0] ss:$28 sps:$4 sm:$0xff]  }
 0x102   : > { %2157 = vmatmul.mubr.bf16.gmra.mrb[8].mxu0 %v4090_v39  ;;  %v4235_v39 = vld [vmem:[#allocation8 + $0x48] sm:$0xff]  }
 0x103   : > { %2166 = vmatprep.mubr.bf16.mxu0 %v4094_v55  ;;  %2306 = vmatpush1.bf16.msra.mxu0 %v4175_v56  ;;  %v4217_v55 = vld [vmem:[%s4645_s13 + $0x31c] ss:$28 sps:$4 sm:$0xff]   ;;  %v4236_v56 = vld [vmem:[#allocation8 + $0x8] sm:$0xff]  }
 0x104   : > { %2307 = vmatprep.subr.bf16.mxu0 %v4183_v41  ;;  %v4196_v41 = vld [vmem:[%s4645_s13 + $0x18] ss:$28 sps:$4 sm:$0xff]  }
 0x107   : > { %2308 = vmatpush1.bf16.msra.mxu0 %v4181_v58  ;;  %1851 = vmatmul.mubr.bf16.gmra.mrb[40].mxu1 %v4138_v63  ;;  %v4239_v58 = vld [vmem:[#allocation8 + $0x58] sm:$0xff]  }
 0x108   : > { %2309 = vmatprep.subr.bf16.mxu0 %v4189_v45  ;;  %1860 = vmatprep.mubr.bf16.mxu1 %v4145_v1  ;;  %v4219_v45 = vld [vmem:[%s4645_s13 + $0x318] ss:$28 sps:$4 sm:$0xff]   ;;  %v4241_v1 = vld [vmem:[#allocation8 + $0x60] sm:$0xff]  }
 0x10a   : > { %2167 = vmatmul.mubr.bf16.gmra.mrb[12].mxu0 %v4096_v46  ;;  %v4221_v46 = vld [vmem:[%s4645_s13 + $0x354] ss:$28 sps:$4 sm:$0xff]  }
 0x10b   : > { %2176 = vmatprep.mubr.bf16.mxu0 %v4100_v59  ;;  %2310 = vmatpush1.bf16.msra.mxu0 %v4187_v0  ;;  %v4240_v59 = vld [vmem:[#allocation8 + $0x18] sm:$0xff]   ;;  %v4200_v0 = vld [vmem:[%s4645_s13 + $0x50] ss:$28 sps:$4 sm:$0xff]  }
 0x10c   : > { %2311 = vmatprep.subr.bf16.mxu0 %v4195_v60  ;;  %v4223_v60 = vld [vmem:[%s4645_s13 + $0x350] ss:$28 sps:$4 sm:$0xff]  }
 0x10f   : > { %2312 = vmatpush1.bf16.msra.mxu0 %v4193_v61  ;;  %1861 = vmatmul.mubr.bf16.gmra.mrb[44].mxu1 %v4147_v3  ;;  %v4212_v61 = vld [vmem:[%s4645_s13 + $0xf8] ss:$28 sps:$4 sm:$0xff]  }
 0x110   : > { %1870 = vmatprep.mubr.bf16.mxu1 %v4151_v4  ;;  %v4220_v4 = vld [vmem:[%s4645_s13 + $0x168] ss:$28 sps:$4 sm:$0xff]  }
 0x112   : > { %2177 = vmatmul.mubr.bf16.gmra.mrb[16].mxu0 %v4102_v62  ;;  %v4216_v62 = vld [vmem:[%s4645_s13 + $0x130] ss:$28 sps:$4 sm:$0xff]  }
 0x113   : > { %2186 = vmatprep.mubr.bf16.mxu0 %v4106_v53 }
 0x117   : > { %1871 = vmatmul.mubr.bf16.gmra.mrb[48].mxu1 %v4153_v18 }
 0x118   : > { %1880 = vmatprep.mubr.bf16.mxu1 %v4160_v5 }
 0x11a   : > { %2187 = vmatmul.mubr.bf16.gmra.mrb[20].mxu0 %v4108_v2 }
 0x11b   : > { %2196 = vmatprep.mubr.bf16.mxu0 %v4112_v13  ;;  %v4242_v13 = vld [vmem:[#allocation8 + $0x20] sm:$0xff]  }
 0x11f   : > { %1881 = vmatmul.mubr.bf16.gmra.mrb[52].mxu1 %v4162_v7 }
 0x120   : > { %1890 = vmatprep.mubr.bf16.mxu1 %v4166_v8 }
 0x122   : > { %2197 = vmatmul.mubr.bf16.gmra.mrb[24].mxu0 %v4114_v14  ;;  %v4243_v14 = vld [vmem:[#allocation8 + $0x68] sm:$0xff]  }
 0x123   : > { %2206 = vmatprep.mubr.bf16.mxu0 %v4118_v16 }
 0x127   : > { %1891 = vmatmul.mubr.bf16.gmra.mrb[56].mxu1 %v4168_v24  ;;  %v4225_v24 = vld [vmem:[%s4645_s13 + $0x1d8] ss:$28 sps:$4 sm:$0xff]  }
 0x128   : > { %1900 = vmatprep.mubr.bf16.mxu1 %v4178_v9 }
 0x12a   : > { %2207 = vmatmul.mubr.bf16.gmra.mrb[28].mxu0 %v4120_v6 }
 0x12b   : > { %2216 = vmatprep.mubr.bf16.mxu0 %v4124_v19  ;;  %v4224_v19 = vld [vmem:[%s4645_s13 + $0x1a0] ss:$28 sps:$4 sm:$0xff]  }
 0x12f   : > { %1901 = vmatmul.mubr.bf16.gmra.mrb[60].mxu1 %v4180_v11 }
 0x130   : > { %2023 = vmatprep.mubr.bf16.mxu1 %v4192_v12  ;;  %v4226_v12 = vld [vmem:[%s4645_s13 + $0x210] ss:$28 sps:$4 sm:$0xff]  }
 0x132   : > { %2217 = vmatmul.mubr.bf16.gmra.mrb[32].mxu0 %v4126_v21 }
 0x133   : > { %2226 = vmatprep.mubr.bf16.mxu0 %v4133_v22 }
 0x137   : > { %2024 = vmatmul.mubr.bf16.vlgmr.msra.gmra.mrb[32].mxu1 %v4190_v32 }
 0x138   : > { %2033 = vmatprep.mubr.bf16.mxu1 %v4197_v15  ;;  %3363 = vmatpush3.bf16.msra.mxu1 %v4234_v52 }
 0x139   : > { %3364 = vmatprep.subr.bf16.mxu1 %v4235_v39  ;;  %v4230_v39 = vld [vmem:[%s4645_s13 + $0x2f0] ss:$28 sps:$4 sm:$0xff]  }
 0x13a   : > { %2227 = vmatmul.mubr.bf16.gmra.mrb[36].mxu0 %v4135_v10 }
 0x13b   : > { %2236 = vmatprep.mubr.bf16.mxu0 %v4139_v26 }
 0x13c   : > { %3365 = vmatpush3.bf16.msra.mxu1 %v4236_v56  ;;  %v4232_v56 = vld [vmem:[%s4645_s13 + $0x360] ss:$28 sps:$4 sm:$0xff]  }
 0x13d   : > { %3366 = vmatprep.subr.bf16.mxu1 %v4237_v42 }
 0x13f   : > { %2034 = vmatmul.mubr.bf16.gmra.mrb[36].mxu1 %v4199_v20 }
 0x140   : > { %2043 = vmatprep.mubr.bf16.mxu1 %v4201_v23  ;;  %3367 = vmatpush3.bf16.msra.mxu1 %v4238_v57  ;;  %v4244_v23 = vld [vmem:[#allocation8 + $0x28] sm:$0xff]  }
 0x141   : > { %3368 = vmatprep.subr.bf16.mxu1 %v4239_v58 }
 0x142   : > { %2237 = vmatmul.mubr.bf16.gmra.mrb[40].mxu0 %v4141_v29 }
 0x143   : > { %2246 = vmatprep.mubr.bf16.mxu0 %v4148_v31 }
 0x144   : > { %3369 = vmatpush3.bf16.msra.mxu1 %v4240_v59 }
 0x145   : > { %3370 = vmatprep.subr.bf16.mxu1 %v4241_v1  ;;  %v572_v1 = vlaneseq }
 0x147   : > { %2044 = vmatmul.mubr.bf16.gmra.mrb[40].mxu1 %v4203_v25  ;;  %v4228_v25 = vld [vmem:[%s4645_s13 + $0x280] ss:$28 sps:$4 sm:$0xff]  }
 0x148   : > { %2053 = vmatprep.mubr.bf16.mxu1 %v4205_v40  ;;  %3371 = vmatpush3.bf16.msra.mxu1 %v4242_v13  ;;  %v4245_v40 = vld [vmem:[#allocation8 + $0x70] sm:$0xff]  }
 0x149   : > { %3372 = vmatprep.subr.bf16.mxu1 %v4243_v14  ;;  %v573_v14 = vshrl.u32 %v572_v1, 7 }
 0x14a   : > { %2247 = vmatmul.mubr.bf16.gmra.mrb[44].mxu0 %v4150_v17  ;;  %v4227_v17 = vld [vmem:[%s4645_s13 + $0x248] ss:$28 sps:$4 sm:$0xff]  }
 0x14b   : > { %2256 = vmatprep.mubr.bf16.mxu0 %v4154_v35 }
 0x14c   : > { %3373 = vmatpush3.bf16.msra.mxu1 %v4244_v23  ;;  %v570_v23 = vld [vmem:[%s5293_s2] sm:$0x3] }
 0x14d   : > { %3374 = vmatprep.subr.bf16.mxu1 %v4245_v40 }
 0x14f   : > { %2054 = vmatmul.mubr.bf16.gmra.mrb[44].mxu1 %v4207_v28  ;;  %v4247_v28 = vld [vmem:[#allocation8 + $0x78] sm:$0xff]  }
 0x150   : > { %2063 = vmatprep.mubr.bf16.mxu1 %v4209_v30 }
 0x152   : > { %2257 = vmatmul.mubr.bf16.gmra.mrb[48].mxu0 %v4156_v36 }
 0x153   : > { %2266 = vmatprep.mubr.bf16.mxu0 %v4163_v38 }
 0x157   : > { %2064 = vmatmul.mubr.bf16.gmra.mrb[48].mxu1 %v4211_v48 }
 0x158   : > { %2073 = vmatprep.mubr.bf16.mxu1 %v4213_v51  ;;  %v4229_v51 = vld [vmem:[%s4645_s13 + $0x2b8] ss:$28 sps:$4 sm:$0xff]  }
 0x15a   : > { %2267 = vmatmul.mubr.bf16.gmra.mrb[52].mxu0 %v4165_v27  ;;  %v4246_v27 = vld [vmem:[#allocation8 + $0x30] sm:$0xff]  }
 0x15b   : > { %2276 = vmatprep.mubr.bf16.mxu0 %v4172_v43  ;;  %3375 = vmatpush3.bf16.msra.mxu1 %v4246_v27 }
 0x15c   : > { %3376 = vmatprep.subr.bf16.mxu1 %v4247_v28 }
 0x15f   : > { %2074 = vmatmul.mubr.bf16.gmra.mrb[52].mxu1 %v4215_v37 }
 0x160   : > { %2083 = vmatprep.mubr.bf16.mxu1 %v4217_v55  ;;  %v4231_v55 = vld [vmem:[%s4645_s13 + $0x328] ss:$28 sps:$4 sm:$0xff]   ;;  %s5247_s13 = scalar_lea.hbm %s5298_s7, %s3359_s11 }
 0x162   : > { %2277 = vmatmul.mubr.bf16.gmra.mrb[56].mxu0 %v4174_v44  ;;  %v4248_v44 = vld [vmem:[#allocation8 + $0x38] sm:$0xff]  }
 0x163   : > { %2286 = vmatprep.mubr.bf16.mxu0 %v4184_v47  ;;  %3377 = vmatpush3.bf16.msra.mxu1 %v4248_v44 }
 0x167   : > { %2084 = vmatmul.mubr.bf16.gmra.mrb[56].mxu1 %v4219_v45 }
 0x168   : > { %2093 = vmatprep.mubr.bf16.mxu1 %v4221_v46 }
 0x16a   : > { %2287 = vmatmul.mubr.bf16.gmra.mrb[60].mxu0 %v4186_v33 }
 0x16b   : > { %2329 = vmatprep.mubr.bf16.mxu0 %v4424_v54 }
 0x16f   : > { %2094 = vmatmul.mubr.bf16.gmra.mrb[60].mxu1 %v4223_v60 }
 0x172   : > { %2330 = vmatmul.mubr.bf16.vlgmr.msra.gmra.mrb[0].mxu0 %v4196_v41 }
 0x173   : > { %2339 = vmatprep.mubr.bf16.mxu0 %v4424_v54 }
 0x17a   : > { %2340 = vmatmul.mubr.bf16.gmra.mrb[4].mxu0 %v4200_v0 }
 0x17b   : > { %2349 = vmatprep.mubr.bf16.mxu0 %v4424_v54 }
 0x182   : > { %2350 = vmatmul.mubr.bf16.gmra.mrb[8].mxu0 %v4204_v49 }
 0x183   : > { %2359 = vmatprep.mubr.bf16.mxu0 %v4424_v54 }
 0x18a   : > { %2360 = vmatmul.mubr.bf16.gmra.mrb[12].mxu0 %v4208_v50  ;;  %v4891_v53 = vpop.f32.mrb[0].mxu1 }
 0x18b   : > { %2369 = vmatprep.mubr.bf16.mxu0 %v4424_v54  ;;  %v4894_v63 = vpop.f32.mrb[1].mxu1 }
 0x18c   : > { %v4896_v2 = vpop.f32.mrb[2].mxu1 }
 0x18d   : > { %v4898_v3 = vpop.f32.mrb[3].mxu1 }
 0x192   : > { %2370 = vmatmul.mubr.bf16.gmra.mrb[16].mxu0 %v4212_v61  ;;  %v4901_v16 = vpop.f32.mrb[4].mxu1 }
 0x193   : > { %2379 = vmatprep.mubr.bf16.mxu0 %v4424_v54  ;;  %v4904_v18 = vpop.f32.mrb[5].mxu1 }
 0x194   : > { %v4906_v5 = vpop.f32.mrb[6].mxu1 }
 0x195   : > { %v4908_v6 = vpop.f32.mrb[7].mxu1 }
 0x19a   : > { %2380 = vmatmul.mubr.bf16.gmra.mrb[20].mxu0 %v4216_v62  ;;  %v4911_v7 = vpop.f32.mrb[8].mxu1 }
 0x19b   : > { %2389 = vmatprep.mubr.bf16.mxu0 %v4424_v54  ;;  %v4914_v8 = vpop.f32.mrb[9].mxu1 }
 0x19c   : > { %v4916_v21 = vpop.f32.mrb[10].mxu1 }
 0x19d   : > { %v4918_v22 = vpop.f32.mrb[11].mxu1 }
 0x1a2   : > { %2390 = vmatmul.mubr.bf16.gmra.mrb[24].mxu0 %v4220_v4  ;;  %v4921_v9 = vpop.f32.mrb[12].mxu1 }
 0x1a3   : > { %2399 = vmatprep.mubr.bf16.mxu0 %v4424_v54  ;;  %v4924_v10 = vpop.f32.mrb[13].mxu1 }
 0x1a4   : > { %v4926_v26 = vpop.f32.mrb[14].mxu1 }
 0x1a5   : > { %v4928_v11 = vpop.f32.mrb[15].mxu1 }
 0x1aa   : > { %2400 = vmatmul.mubr.bf16.gmra.mrb[28].mxu0 %v4224_v19  ;;  %v4931_v29 = vpop.f32.mrb[16].mxu1 }
 0x1ab   : > { %2409 = vmatprep.mubr.bf16.mxu0 %v4424_v54  ;;  %v4934_v31 = vpop.f32.mrb[17].mxu1 }
 0x1ac   : > { %v4936_v32 = vpop.f32.mrb[18].mxu1 }
 0x1ad   : > { %v4938_v15 = vpop.f32.mrb[19].mxu1 }
 0x1b2   : > { %2410 = vmatmul.mubr.bf16.gmra.mrb[32].mxu0 %v4225_v24  ;;  %v4941_v35 = vpop.f32.mrb[20].mxu1 }
 0x1b3   : > { %2419 = vmatprep.mubr.bf16.mxu0 %v4424_v54  ;;  %v4944_v20 = vpop.f32.mrb[21].mxu1 }
 0x1b4   : > { %v4946_v36 = vpop.f32.mrb[22].mxu1 }
 0x1b5   : > { %v4948_v38 = vpop.f32.mrb[23].mxu1 }
 0x1ba   : > { %2420 = vmatmul.mubr.bf16.gmra.mrb[36].mxu0 %v4226_v12  ;;  %v4951_v43 = vpop.f32.mrb[24].mxu1  ;;  %v574_v12 = vsub.s32 0, %v573_v14 }
 0x1bb   : > { %2429 = vmatprep.mubr.bf16.mxu0 %v4424_v54  ;;  %v4954_v30 = vpop.f32.mrb[25].mxu1 }
 0x1bc   : > { %v4956_v47 = vpop.f32.mrb[26].mxu1  ;;  %v5018_v27 = vrot.slane %v570_v23, %v574_v12 }
 0x1bd   : > { %v4958_v48 = vpop.f32.mrb[27].mxu1 }
 0x1be   : > { %v1757_v12 = vadd.f32 %v4896_v2, %v5018_v27  ;;  %v1763_v2 = vadd.f32 %v4901_v16, %v5018_v27 }
 0x1c2   : > { %2430 = vmatmul.mubr.bf16.gmra.mrb[40].mxu0 %v4227_v17  ;;  %v4961_v33 = vpop.f32.mrb[28].mxu1 }
 0x1c3   : > { %2439 = vmatprep.mubr.bf16.mxu0 %v4424_v54  ;;  %v4964_v34 = vpop.f32.mrb[29].mxu1 }
 0x1c4   : > { %v4966_v52 = vpop.f32.mrb[30].mxu1 }
 0x1c5   : > { %v4968_v37 = vpop.f32.mrb[31].mxu1 }
 0x1ca   : > { %2440 = vmatmul.mubr.bf16.gmra.mrb[44].mxu0 %v4228_v25  ;;  %v578_v25 = vsub.s32 1, %v573_v14 }
 0x1cb   : > { %2449 = vmatprep.mubr.bf16.mxu0 %v4424_v54 }
 0x1cc   : > { %v5020_v28 = vrot.slane %v570_v23, %v578_v25 }
 0x1d2   : > { %2450 = vmatmul.mubr.bf16.gmra.mrb[48].mxu0 %v4229_v51 }
 0x1d3   : > { %2459 = vmatprep.mubr.bf16.mxu0 %v4424_v54 }
 0x1da   : > { %2460 = vmatmul.mubr.bf16.gmra.mrb[52].mxu0 %v4230_v39  ;;  %v1753_v39 = vadd.f32 %v4891_v53, %v5018_v27 }
 0x1db   : > { %2469 = vmatprep.mubr.bf16.mxu0 %v4424_v54 }
 0x1e2   : > { %2470 = vmatmul.mubr.bf16.gmra.mrb[56].mxu0 %v4231_v55 }
 0x1e3   : > { %2479 = vmatprep.mubr.bf16.mxu0 %v4424_v54 }
 0x1ea   : > { %2480 = vmatmul.mubr.bf16.gmra.mrb[60].mxu0 %v4232_v56  ;;  %v1755_v56 = vadd.f32 %v4894_v63, %v5020_v28 }
 0x20a   : > { %v4975_v41 = vpop.f32.mrb[32].mxu1 }
 0x20b   : > { %v4977_v42 = vpop.f32.mrb[33].mxu1 }
 0x20c   : > { %v4979_v57 = vpop.f32.mrb[34].mxu1 }
 0x20d   : > { %v4981_v58 = vpop.f32.mrb[35].mxu1 }
 0x212   : > { %v4983_v45 = vpop.f32.mrb[36].mxu1 }
 0x213   : > { %v4985_v46 = vpop.f32.mrb[37].mxu1 }
 0x214   : > { %v4987_v59 = vpop.f32.mrb[38].mxu1 }
 0x215   : > { %v4989_v0 = vpop.f32.mrb[39].mxu1 }
 0x21a   : > { %v4991_v60 = vpop.f32.mrb[40].mxu1 }
 0x21b   : > { %v4993_v54 = vpop.f32.mrb[41].mxu1 }
 0x21c   : > { %v4995_v49 = vpop.f32.mrb[42].mxu1 }
 0x21d   : > { %v4997_v50 = vpop.f32.mrb[43].mxu1 }
 0x222   : > { %v4999_v61 = vpop.f32.mrb[44].mxu1 }
 0x223   : > { %v5001_v62 = vpop.f32.mrb[45].mxu1 }
 0x224   : > { %v5003_v13 = vpop.f32.mrb[46].mxu1 }
 0x225   : > { %5312 = vst [vmem:[#allocation13_spill] sm:$0xff] %v5003_v13  ;;  %v5005_v4 = vpop.f32.mrb[47].mxu1 }
 0x226   : > { %5313 = vst [vmem:[#allocation14_spill] sm:$0xff] %v5005_v4 }
 0x22a   : > { %v5007_v19 = vpop.f32.mrb[48].mxu1 }
 0x22b   : > { %5314 = vst [vmem:[#allocation15_spill] sm:$0xff] %v5007_v19  ;;  %v5009_v24 = vpop.f32.mrb[49].mxu1 }
 0x22c   : > { %5315 = vst [vmem:[#allocation16_spill] sm:$0xff] %v5009_v24  ;;  %v5011_v17 = vpop.f32.mrb[50].mxu1 }
 0x22d   : > { %5316 = vst [vmem:[#allocation17_spill] sm:$0xff] %v5011_v17  ;;  %v5016_v40 = vpop.f32.mrb[51].mxu1 }
 0x22e   : > { %5317 = vst [vmem:[#allocation18_spill] sm:$0xff] %v5016_v40 }
 0x232   : > { %v5022_v44 = vpop.f32.mrb[52].mxu1 }
 0x233   : > { %5318 = vst [vmem:[#allocation19_spill] sm:$0xff] %v5022_v44  ;;  %v5024_v51 = vpop.f32.mrb[53].mxu1  ;;  %v1759_v44 = vadd.f32 %v4898_v3, %v5020_v28  ;;  %v1765_v3 = vadd.f32 %v4904_v18, %v5020_v28 }
 0x234   : > { %5319 = vst [vmem:[#allocation20_spill] sm:$0xff] %v5024_v51  ;;  %v5028_v55 = vpop.f32.mrb[54].mxu1 }
 0x235   : > { %5320 = vst [vmem:[#allocation21_spill] sm:$0xff] %v5028_v55  ;;  %v5032_v14 = vpop.f32.mrb[55].mxu1 }
 0x236   : > { %5321 = vst [vmem:[#allocation22_spill] sm:$0xff] %v5032_v14 }
 0x23a   : > { %v5038_v4 = vpop.f32.mrb[56].mxu1 }
 0x23b   : > { %v5040_v14 = vpop.f32.mrb[57].mxu1 }
 0x245   : > { %v2331_v1 = vpop.f32.mrb[0].mxu0 }
 0x246   : > { %v3573_v23 = vadd.f32 %v2331_v1, %v1753_v39  ;;  %v2333_v25 = vpop.f32.mrb[1].mxu0  ;;  %v5044_v1 = vpop.f32.mrb[58].mxu1 }
 0x247   : > { %v3575_v51 = vadd.f32 %v2333_v25, %v1755_v56  ;;  %v2335_v40 = vpop.f32.mrb[2].mxu0  ;;  %5322 = vst [vmem:[#allocation23_spill] sm:$0xff] %v5044_v1 }
 0x248   : > { %v3577_v17 = vadd.f32 %v2335_v40, %v1757_v12  ;;  %v2337_v53 = vpop.f32.mrb[3].mxu0  ;;  %v2490_v55 = vmax.f32 %v3573_v23, 0.0  ;;  %v1769_v12 = vadd.f32 %v4908_v6, %v5020_v28 }
 0x249   : > { %v3579_v24 = vadd.f32 %v2337_v53, %v1759_v44  ;;  %v2491_v63 = vmax.f32 %v3575_v51, 0.0  ;;  %v5048_v44 = vpop.f32.mrb[59].mxu1 }
 0x24a   : > { %v2492_v19 = vmax.f32 %v3577_v17, 0.0  ;;  %5323 = vst [vmem:[#allocation24_spill] sm:$0xff] %v5048_v44  ;;  %v1767_v17 = vadd.f32 %v4906_v5, %v5018_v27  ;;  %v5054_v53 = vpop.f32.mrb[60].mxu1  ;;  %v1773_v5 = vadd.f32 %v4911_v7, %v5018_v27 }
 0x24b   : > { %v2493_v13 = vmax.f32 %v3579_v24, 0.0  ;;  %v5056_v1 = vpop.f32.mrb[61].mxu1 }
 0x24c   : > { %v2554_v39 = vpack.c.bf16 %v2492_v19, %v2490_v55  ;;  %v5060_v6 = vpop.f32.mrb[62].mxu1 }
 0x24d   : > { %v2555_v40 = vpack.c.bf16 %v2493_v13, %v2491_v63  ;;  %v2341_v56 = vpop.f32.mrb[4].mxu0 }
 0x24e   : > { %v3581_v51 = vadd.f32 %v2341_v56, %v1763_v2  ;;  %v2343_v24 = vpop.f32.mrb[5].mxu0  ;;  %v5064_v56 = vpop.f32.mrb[63].mxu1 }
 0x24f   : > { %v3583_v23 = vadd.f32 %v2343_v24, %v1765_v3  ;;  %v2345_v16 = vpop.f32.mrb[6].mxu0  ;;  %2753 = vmatprep.mubr.bf16.mxu1 %v2555_v40  ;;  %v1775_v3 = vadd.f32 %v4914_v8, %v5020_v28 }
 0x250   : > { %v3585_v19 = vadd.f32 %v2345_v16, %v1767_v17  ;;  %v2347_v55 = vpop.f32.mrb[7].mxu0  ;;  %2754 = vmatmul.mubr.bf16.vlgmr.msra.gmra.mrb[64].mxu1 %v2554_v39  ;;  %v2494_v18 = vmax.f32 %v3581_v51, 0.0  ;;  %v1777_v17 = vadd.f32 %v4916_v21, %v5018_v27 }
 0x251   : > { %v3587_v25 = vadd.f32 %v2347_v55, %v1769_v12  ;;  %v2495_v63 = vmax.f32 %v3583_v23, 0.0  ;;  %v1779_v12 = vadd.f32 %v4918_v22, %v5020_v28 }
 0x252   : > { %v2496_v13 = vmax.f32 %v3585_v19, 0.0 }
 0x253   : > { %v2497_v44 = vmax.f32 %v3587_v25, 0.0 }
 0x254   : > { %v2556_v2 = vpack.c.bf16 %v2496_v13, %v2494_v18  ;;  %v1783_v13 = vadd.f32 %v4921_v9, %v5018_v27 }
 0x255   : > { %v2557_v40 = vpack.c.bf16 %v2497_v44, %v2495_v63  ;;  %v2351_v39 = vpop.f32.mrb[8].mxu0  ;;  %v1785_v63 = vadd.f32 %v4924_v10, %v5020_v28 }
 0x256   : > { %v3589_v51 = vadd.f32 %v2351_v39, %v1773_v5  ;;  %v2353_v24 = vpop.f32.mrb[9].mxu0 }
 0x257   : > { %v3591_v23 = vadd.f32 %v2353_v24, %v1775_v3  ;;  %v2355_v7 = vpop.f32.mrb[10].mxu0  ;;  %2761 = vmatprep.mubr.bf16.mxu1 %v2557_v40  ;;  %v1787_v3 = vadd.f32 %v4926_v26, %v5018_v27 }
 0x258   : > { %v3593_v16 = vadd.f32 %v2355_v7, %v1777_v17  ;;  %v2357_v19 = vpop.f32.mrb[11].mxu0  ;;  %2762 = vmatmul.mubr.bf16.gmra.mrb[68].mxu1 %v2556_v2  ;;  %v2498_v8 = vmax.f32 %v3589_v51, 0.0  ;;  %v1789_v2 = vadd.f32 %v4928_v11, %v5020_v28 }
 0x259   : > { %v3595_v55 = vadd.f32 %v2357_v19, %v1779_v12  ;;  %v2499_v25 = vmax.f32 %v3591_v23, 0.0  ;;  %v1793_v19 = vadd.f32 %v4931_v29, %v5018_v27 }
 0x25a   : > { %v2500_v44 = vmax.f32 %v3593_v16, 0.0 }
 0x25b   : > { %v2501_v18 = vmax.f32 %v3595_v55, 0.0  ;;  %v1795_v55 = vadd.f32 %v4934_v31, %v5020_v28 }
 0x25c   : > { %v2558_v21 = vpack.c.bf16 %v2500_v44, %v2498_v8  ;;  %v1797_v44 = vadd.f32 %v4936_v32, %v5018_v27 }
 0x25d   : > { %v2559_v5 = vpack.c.bf16 %v2501_v18, %v2499_v25  ;;  %v2361_v22 = vpop.f32.mrb[12].mxu0 }
 0x25e   : > { %v3597_v40 = vadd.f32 %v2361_v22, %v1783_v13  ;;  %v2363_v39 = vpop.f32.mrb[13].mxu0  ;;  %v1799_v13 = vadd.f32 %v4938_v15, %v5020_v28 }
 0x25f   : > { %v3599_v17 = vadd.f32 %v2363_v39, %v1785_v63  ;;  %v2365_v51 = vpop.f32.mrb[14].mxu0  ;;  %2769 = vmatprep.mubr.bf16.mxu1 %v2559_v5 }
 0x260   : > { %v3601_v24 = vadd.f32 %v2365_v51, %v1787_v3  ;;  %v2367_v12 = vpop.f32.mrb[15].mxu0  ;;  %2770 = vmatmul.mubr.bf16.gmra.mrb[72].mxu1 %v2558_v21  ;;  %v2502_v23 = vmax.f32 %v3597_v40, 0.0 }
 0x261   : > { %v3603_v9 = vadd.f32 %v2367_v12, %v1789_v2  ;;  %v2503_v10 = vmax.f32 %v3599_v17, 0.0  ;;  %v1803_v2 = vadd.f32 %v4941_v35, %v5018_v27  ;;  %v1805_v17 = vadd.f32 %v4944_v20, %v5020_v28 }
 0x262   : > { %v2504_v7 = vmax.f32 %v3601_v24, 0.0  ;;  %v1807_v24 = vadd.f32 %v4946_v36, %v5018_v27 }
 0x263   : > { %v2505_v16 = vmax.f32 %v3603_v9, 0.0 }
 0x264   : > { %v2560_v26 = vpack.c.bf16 %v2504_v7, %v2502_v23  ;;  %v1809_v23 = vadd.f32 %v4948_v38, %v5020_v28 }
 0x265   : > { %v2561_v8 = vpack.c.bf16 %v2505_v16, %v2503_v10  ;;  %v2371_v11 = vpop.f32.mrb[16].mxu0 }
 0x266   : > { %v3605_v25 = vadd.f32 %v2371_v11, %v1793_v19  ;;  %v2373_v18 = vpop.f32.mrb[17].mxu0  ;;  %v1813_v11 = vadd.f32 %v4951_v43, %v5018_v27 }
 0x267   : > { %v3607_v21 = vadd.f32 %v2373_v18, %v1795_v55  ;;  %v2375_v63 = vpop.f32.mrb[18].mxu0  ;;  %2777 = vmatprep.mubr.bf16.mxu1 %v2561_v8  ;;  %v1817_v18 = vadd.f32 %v4956_v47, %v5018_v27 }
 0x268   : > { %v3609_v5 = vadd.f32 %v2375_v63, %v1797_v44  ;;  %v2377_v22 = vpop.f32.mrb[19].mxu0  ;;  %2778 = vmatmul.mubr.bf16.gmra.mrb[76].mxu1 %v2560_v26  ;;  %v2506_v3 = vmax.f32 %v3605_v25, 0.0  ;;  %v1815_v44 = vadd.f32 %v4954_v30, %v5020_v28  ;;  %v1819_v63 = vadd.f32 %v4958_v48, %v5020_v28 }
 0x269   : > { %v3611_v29 = vadd.f32 %v2377_v22, %v1799_v13  ;;  %v2507_v31 = vmax.f32 %v3607_v21, 0.0 }
 0x26a   : > { %v2508_v40 = vmax.f32 %v3609_v5, 0.0 }
 0x26b   : > { %v2509_v39 = vmax.f32 %v3611_v29, 0.0 }
 0x26c   : > { %v2562_v32 = vpack.c.bf16 %v2508_v40, %v2506_v3 }
 0x26d   : > { %v2563_v51 = vpack.c.bf16 %v2509_v39, %v2507_v31  ;;  %v2381_v15 = vpop.f32.mrb[20].mxu0 }
 0x26e   : > { %v3613_v12 = vadd.f32 %v2381_v15, %v1803_v2  ;;  %v2383_v9 = vpop.f32.mrb[21].mxu0  ;;  %v1823_v2 = vadd.f32 %v4961_v33, %v5018_v27 }
 0x26f   : > { %v3615_v7 = vadd.f32 %v2383_v9, %v1805_v17  ;;  %v2385_v10 = vpop.f32.mrb[22].mxu0  ;;  %2785 = vmatprep.mubr.bf16.mxu1 %v2563_v51  ;;  %v1827_v51 = vadd.f32 %v4966_v52, %v5018_v27 }
 0x270   : > { %v3617_v16 = vadd.f32 %v2385_v10, %v1807_v24  ;;  %v2387_v19 = vpop.f32.mrb[23].mxu0  ;;  %2786 = vmatmul.mubr.bf16.gmra.mrb[80].mxu1 %v2562_v32  ;;  %v2510_v26 = vmax.f32 %v3613_v12, 0.0  ;;  %v1825_v32 = vadd.f32 %v4964_v34, %v5020_v28  ;;  %v1829_v12 = vadd.f32 %v4968_v37, %v5020_v28 }
 0x271   : > { %v3619_v35 = vadd.f32 %v2387_v19, %v1809_v23  ;;  %v2511_v20 = vmax.f32 %v3615_v7, 0.0 }
 0x272   : > { %v2512_v55 = vmax.f32 %v3617_v16, 0.0 }
 0x273   : > { %v2513_v8 = vmax.f32 %v3619_v35, 0.0 }
 0x274   : > { %v2564_v36 = vpack.c.bf16 %v2512_v55, %v2510_v26  ;;  %v3636_v26 = vadd.f32 %v4975_v41, %v5018_v27  ;;  %v3638_v55 = vadd.f32 %v4977_v42, %v5020_v28 }
 0x275   : > { %v2565_v25 = vpack.c.bf16 %v2513_v8, %v2511_v20  ;;  %v2391_v38 = vpop.f32.mrb[24].mxu0  ;;  %v3640_v8 = vadd.f32 %v4979_v57, %v5018_v27 }
 0x276   : > { %v3621_v13 = vadd.f32 %v2391_v38, %v1813_v11  ;;  %v2393_v21 = vpop.f32.mrb[25].mxu0 }
 0x277   : > { %v3623_v5 = vadd.f32 %v2393_v21, %v1815_v44  ;;  %v2395_v22 = vpop.f32.mrb[26].mxu0  ;;  %2793 = vmatprep.mubr.bf16.mxu1 %v2565_v25  ;;  %v3642_v44 = vadd.f32 %v4981_v58, %v5020_v28 }
 0x278   : > { %v3625_v29 = vadd.f32 %v2395_v22, %v1817_v18  ;;  %v2397_v3 = vpop.f32.mrb[27].mxu0  ;;  %2794 = vmatmul.mubr.bf16.gmra.mrb[84].mxu1 %v2564_v36  ;;  %v2514_v40 = vmax.f32 %v3621_v13, 0.0  ;;  %v3644_v22 = vadd.f32 %v4983_v45, %v5018_v27 }
 0x279   : > { %v3627_v43 = vadd.f32 %v2397_v3, %v1819_v63  ;;  %v2515_v30 = vmax.f32 %v3623_v5, 0.0 }
 0x27a   : > { %v2516_v31 = vmax.f32 %v3625_v29, 0.0  ;;  %v3646_v29 = vadd.f32 %v4985_v46, %v5020_v28 }
 0x27b   : > { %v2517_v39 = vmax.f32 %v3627_v43, 0.0  ;;  %v3648_v43 = vadd.f32 %v4987_v59, %v5018_v27 }
 0x27c   : > { %v2566_v47 = vpack.c.bf16 %v2516_v31, %v2514_v40 }
 0x27d   : > { %v2567_v17 = vpack.c.bf16 %v2517_v39, %v2515_v30  ;;  %v2401_v48 = vpop.f32.mrb[28].mxu0  ;;  %v3650_v30 = vadd.f32 %v4989_v0, %v5020_v28 }
 0x27e   : > { %v3629_v15 = vadd.f32 %v2401_v48, %v1823_v2  ;;  %v2403_v24 = vpop.f32.mrb[29].mxu0 }
 0x27f   : > { %v3631_v9 = vadd.f32 %v2403_v24, %v1825_v32  ;;  %v2405_v23 = vpop.f32.mrb[30].mxu0  ;;  %2801 = vmatprep.mubr.bf16.mxu1 %v2567_v17  ;;  %v3654_v24 = vadd.f32 %v4993_v54, %v5020_v28 }
 0x280   : > { %v3633_v7 = vadd.f32 %v2405_v23, %v1827_v51  ;;  %v2407_v10 = vpop.f32.mrb[31].mxu0  ;;  %2802 = vmatmul.mubr.bf16.gmra.mrb[88].mxu1 %v2566_v47  ;;  %v2518_v16 = vmax.f32 %v3629_v15, 0.0  ;;  %v3652_v15 = vadd.f32 %v4991_v60, %v5018_v27 }
 0x281   : > { %v3635_v33 = vadd.f32 %v2407_v10, %v1829_v12  ;;  %v2519_v34 = vmax.f32 %v3631_v9, 0.0  ;;  %v3656_v9 = vadd.f32 %v4995_v49, %v5018_v27  ;;  %v3658_v10 = vadd.f32 %v4997_v50, %v5020_v28 }
 0x282   : > { %v2520_v19 = vmax.f32 %v3633_v7, 0.0 }
 0x283   : > { %v2521_v35 = vmax.f32 %v3635_v33, 0.0 }
 0x284   : > { %v2568_v52 = vpack.c.bf16 %v2520_v19, %v2518_v16 }
 0x285   : > { %v2569_v20 = vpack.c.bf16 %v2521_v35, %v2519_v34  ;;  %v2411_v37 = vpop.f32.mrb[32].mxu0 }
 0x286   : > { %v3637_v11 = vadd.f32 %v3636_v26, %v2411_v37  ;;  %v2413_v36 = vpop.f32.mrb[33].mxu0 }
 0x287   : > { %v3639_v25 = vadd.f32 %v3638_v55, %v2413_v36  ;;  %v2415_v38 = vpop.f32.mrb[34].mxu0  ;;  %2809 = vmatprep.mubr.bf16.mxu1 %v2569_v20  ;;  %v3660_v55 = vadd.f32 %v4999_v61, %v5018_v27  ;;  %v3662_v20 = vadd.f32 %v5001_v62, %v5020_v28 }
 0x288   : > { %v3641_v18 = vadd.f32 %v3640_v8, %v2415_v38  ;;  %v2417_v13 = vpop.f32.mrb[35].mxu0  ;;  %2810 = vmatmul.mubr.bf16.gmra.mrb[92].mxu1 %v2568_v52  ;;  %v2522_v21 = vmax.f32 %v3637_v11, 0.0  ;;  %v5324_v8 = vld [vmem:[#allocation13_spill] sm:$0xff] }
 0x289   : > { %v3643_v41 = vadd.f32 %v3642_v44, %v2417_v13  ;;  %v2523_v42 = vmax.f32 %v3639_v25, 0.0  ;;  %v3664_v11 = vadd.f32 %v5324_v8, %v5018_v27  ;;  %v5325_v25 = vld [vmem:[#allocation14_spill] sm:$0xff] }
 0x28a   : > { %v2524_v63 = vmax.f32 %v3641_v18, 0.0  ;;  %v3666_v38 = vadd.f32 %v5325_v25, %v5020_v28 }
 0x28b   : > { %v2525_v5 = vmax.f32 %v3643_v41, 0.0 }
 0x28c   : > { %v2570_v57 = vpack.c.bf16 %v2524_v63, %v2522_v21 }
 0x28d   : > { %v2571_v3 = vpack.c.bf16 %v2525_v5, %v2523_v42  ;;  %v2421_v58 = vpop.f32.mrb[36].mxu0 }
 0x28e   : > { %v3645_v40 = vadd.f32 %v3644_v22, %v2421_v58  ;;  %v2423_v31 = vpop.f32.mrb[37].mxu0  ;;  %v5326_v22 = vld [vmem:[#allocation15_spill] sm:$0xff] }
 0x28f   : > { %v3647_v39 = vadd.f32 %v3646_v29, %v2423_v31  ;;  %v2425_v2 = vpop.f32.mrb[38].mxu0  ;;  %2817 = vmatprep.mubr.bf16.mxu1 %v2571_v3  ;;  %v5327_v3 = vld [vmem:[#allocation16_spill] sm:$0xff]  ;;  %v5328_v31 = vld [vmem:[#allocation17_spill] sm:$0xff] }
 0x290   : > { %v3649_v47 = vadd.f32 %v3648_v43, %v2425_v2  ;;  %v2427_v32 = vpop.f32.mrb[39].mxu0  ;;  %2818 = vmatmul.mubr.bf16.gmra.mrb[96].mxu1 %v2570_v57  ;;  %v2526_v17 = vmax.f32 %v3645_v40, 0.0  ;;  %v3668_v57 = vadd.f32 %v5326_v22, %v5018_v27  ;;  %v3670_v58 = vadd.f32 %v5327_v3, %v5020_v28 }
 0x291   : > { %v3651_v45 = vadd.f32 %v3650_v30, %v2427_v32  ;;  %v2527_v46 = vmax.f32 %v3647_v39, 0.0  ;;  %v3672_v30 = vadd.f32 %v5328_v31, %v5018_v27 }
 0x292   : > { %v2528_v48 = vmax.f32 %v3649_v47, 0.0  ;;  %v5329_v47 = vld [vmem:[#allocation18_spill] sm:$0xff] }
 0x293   : > { %v2529_v51 = vmax.f32 %v3651_v45, 0.0  ;;  %v3674_v32 = vadd.f32 %v5329_v47, %v5020_v28  ;;  %v3696_v47 = vadd.f32 %v5060_v6, %v5018_v27 }
 0x294   : > { %v2572_v59 = vpack.c.bf16 %v2528_v48, %v2526_v17 }
 0x295   : > { %v2573_v12 = vpack.c.bf16 %v2529_v51, %v2527_v46  ;;  %v2431_v0 = vpop.f32.mrb[40].mxu0 }
 0x296   : > { %v3653_v23 = vadd.f32 %v3652_v15, %v2431_v0  ;;  %v2433_v7 = vpop.f32.mrb[41].mxu0  ;;  %v5330_v0 = vld [vmem:[#allocation19_spill] sm:$0xff] }
 0x297   : > { %v3655_v33 = vadd.f32 %v3654_v24, %v2433_v7  ;;  %v2435_v16 = vpop.f32.mrb[42].mxu0  ;;  %2825 = vmatprep.mubr.bf16.mxu1 %v2573_v12  ;;  %v5331_v7 = vld [vmem:[#allocation20_spill] sm:$0xff] }
 0x298   : > { %v3657_v19 = vadd.f32 %v3656_v9, %v2435_v16  ;;  %v2437_v34 = vpop.f32.mrb[43].mxu0  ;;  %2826 = vmatmul.mubr.bf16.gmra.mrb[100].mxu1 %v2572_v59  ;;  %v2530_v35 = vmax.f32 %v3653_v23, 0.0  ;;  %v3676_v9 = vadd.f32 %v5330_v0, %v5018_v27 }
 0x299   : > { %v3659_v60 = vadd.f32 %v3658_v10, %v2437_v34  ;;  %v2531_v54 = vmax.f32 %v3655_v33, 0.0  ;;  %v3678_v10 = vadd.f32 %v5331_v7, %v5020_v28 }
 0x29a   : > { %v2532_v26 = vmax.f32 %v3657_v19, 0.0  ;;  %v5332_v19 = vld [vmem:[#allocation21_spill] sm:$0xff] }
 0x29b   : > { %v2533_v52 = vmax.f32 %v3659_v60, 0.0  ;;  %v3680_v34 = vadd.f32 %v5332_v19, %v5018_v27 }
 0x29c   : > { %v2574_v49 = vpack.c.bf16 %v2532_v26, %v2530_v35  ;;  %v5333_v26 = vld [vmem:[#allocation22_spill] sm:$0xff] }
 0x29d   : > { %v2575_v37 = vpack.c.bf16 %v2533_v52, %v2531_v54  ;;  %v2441_v50 = vpop.f32.mrb[44].mxu0  ;;  %v3682_v54 = vadd.f32 %v5333_v26, %v5020_v28 }
 0x29e   : > { %v3661_v36 = vadd.f32 %v3660_v55, %v2441_v50  ;;  %v2443_v44 = vpop.f32.mrb[45].mxu0 }
 0x29f   : > { %v3663_v18 = vadd.f32 %v3662_v20, %v2443_v44  ;;  %v2445_v13 = vpop.f32.mrb[46].mxu0  ;;  %2833 = vmatprep.mubr.bf16.mxu1 %v2575_v37  ;;  %v3684_v44 = vadd.f32 %v5038_v4, %v5018_v27 }
 0x2a0   : > { %v3665_v41 = vadd.f32 %v3664_v11, %v2445_v13  ;;  %v2447_v21 = vpop.f32.mrb[47].mxu0  ;;  %2834 = vmatmul.mubr.bf16.gmra.mrb[104].mxu1 %v2574_v49  ;;  %v2534_v63 = vmax.f32 %v3661_v36, 0.0 }
 0x2a1   : > { %v3667_v61 = vadd.f32 %v3666_v38, %v2447_v21  ;;  %v2535_v62 = vmax.f32 %v3663_v18, 0.0  ;;  %v3686_v38 = vadd.f32 %v5040_v14, %v5020_v28 }
 0x2a2   : > { %v2536_v42 = vmax.f32 %v3665_v41, 0.0  ;;  %v5334_v41 = vld [vmem:[#allocation23_spill] sm:$0xff] }
 0x2a3   : > { %v2537_v5 = vmax.f32 %v3667_v61, 0.0  ;;  %v3688_v21 = vadd.f32 %v5334_v41, %v5018_v27 }
 0x2a4   : > { %v2576_v29 = vpack.c.bf16 %v2536_v42, %v2534_v63  ;;  %v5335_v42 = vld [vmem:[#allocation24_spill] sm:$0xff] }
 0x2a5   : > { %v2577_v43 = vpack.c.bf16 %v2537_v5, %v2535_v62  ;;  %v2451_v40 = vpop.f32.mrb[48].mxu0  ;;  %v3690_v62 = vadd.f32 %v5335_v42, %v5020_v28 }
 0x2a6   : > { %v3669_v39 = vadd.f32 %v3668_v57, %v2451_v40  ;;  %v2453_v2 = vpop.f32.mrb[49].mxu0  ;;  %v3692_v40 = vadd.f32 %v5054_v53, %v5018_v27 }
 0x2a7   : > { %v3671_v45 = vadd.f32 %v3670_v58, %v2453_v2  ;;  %v2455_v17 = vpop.f32.mrb[50].mxu0  ;;  %2841 = vmatprep.mubr.bf16.mxu1 %v2577_v43 }
 0x2a8   : > { %v3673_v48 = vadd.f32 %v3672_v30, %v2455_v17  ;;  %v2457_v46 = vpop.f32.mrb[51].mxu0  ;;  %2842 = vmatmul.mubr.bf16.gmra.mrb[108].mxu1 %v2576_v29  ;;  %v2538_v15 = vmax.f32 %v3669_v39, 0.0  ;;  %v3694_v30 = vadd.f32 %v5056_v1, %v5020_v28  ;;  %v3698_v17 = vadd.f32 %v5064_v56, %v5020_v28  ;;  %v5177_v28 = vld [vmem:[%s5295_s4] ss:$0 sm:$0xff] }
 0x2a9   : > { %v3675_v51 = vadd.f32 %v3674_v32, %v2457_v46  ;;  %v2539_v24 = vmax.f32 %v3671_v45, 0.0 }
 0x2aa   : > { %v2540_v59 = vmax.f32 %v3673_v48, 0.0 }
 0x2ab   : > { %v2541_v12 = vmax.f32 %v3675_v51, 0.0 }
 0x2ac   : > { %v2578_v23 = vpack.c.bf16 %v2540_v59, %v2538_v15 }
 0x2ad   : > { %v2579_v33 = vpack.c.bf16 %v2541_v12, %v2539_v24  ;;  %v2461_v16 = vpop.f32.mrb[52].mxu0 }
 0x2ae   : > { %v3677_v60 = vadd.f32 %v3676_v9, %v2461_v16  ;;  %v2463_v35 = vpop.f32.mrb[53].mxu0  ;;  %v5183_v16 = vld [vmem:[%s5296_s5] sm:$0xff] }
 0x2af   : > { %v3679_v52 = vadd.f32 %v3678_v10, %v2463_v35  ;;  %v2465_v55 = vpop.f32.mrb[54].mxu0  ;;  %2849 = vmatprep.mubr.bf16.mxu1 %v2579_v33 }
 0x2b0   : > { %v3681_v49 = vadd.f32 %v3680_v34, %v2465_v55  ;;  %v2467_v20 = vpop.f32.mrb[55].mxu0  ;;  %2850 = vmatmul.mubr.bf16.gmra.mrb[112].mxu1 %v2578_v23  ;;  %v2542_v50 = vmax.f32 %v3677_v60, 0.0 }
 0x2b1   : > { %v3683_v37 = vadd.f32 %v3682_v54, %v2467_v20  ;;  %v2543_v11 = vmax.f32 %v3679_v52, 0.0 }
 0x2b2   : > { %v2544_v8 = vmax.f32 %v3681_v49, 0.0 }
 0x2b3   : > { %v2545_v36 = vmax.f32 %v3683_v37, 0.0 }
 0x2b4   : > { %v2580_v25 = vpack.c.bf16 %v2544_v8, %v2542_v50 }
 0x2b5   : > { %v2581_v18 = vpack.c.bf16 %v2545_v36, %v2543_v11  ;;  %v2471_v13 = vpop.f32.mrb[56].mxu0 }
 0x2b6   : > { %v3685_v61 = vadd.f32 %v3684_v44, %v2471_v13  ;;  %v2473_v63 = vpop.f32.mrb[57].mxu0 }
 0x2b7   : > { %v3687_v5 = vadd.f32 %v3686_v38, %v2473_v63  ;;  %v2475_v22 = vpop.f32.mrb[58].mxu0  ;;  %2857 = vmatprep.mubr.bf16.mxu1 %v2581_v18 }
 0x2b8   : > { %v3689_v57 = vadd.f32 %v3688_v21, %v2475_v22  ;;  %v2477_v29 = vpop.f32.mrb[59].mxu0  ;;  %2858 = vmatmul.mubr.bf16.gmra.mrb[116].mxu1 %v2580_v25  ;;  %v2546_v3 = vmax.f32 %v3685_v61, 0.0 }
 0x2b9   : > { %v3691_v4 = vadd.f32 %v3690_v62, %v2477_v29  ;;  %v2547_v14 = vmax.f32 %v3687_v5, 0.0 }
 0x2ba   : > { %v2548_v58 = vmax.f32 %v3689_v57, 0.0 }
 0x2bb   : > { %v2549_v43 = vmax.f32 %v3691_v4, 0.0 }
 0x2bc   : > { %v2582_v31 = vpack.c.bf16 %v2548_v58, %v2546_v3 }
 0x2bd   : > { %v2583_v39 = vpack.c.bf16 %v2549_v43, %v2547_v14  ;;  %v2481_v2 = vpop.f32.mrb[60].mxu0 }
 0x2be   : > { %v3693_v32 = vadd.f32 %v3692_v40, %v2481_v2  ;;  %v2483_v45 = vpop.f32.mrb[61].mxu0 }
 0x2bf   : > { %v3695_v48 = vadd.f32 %v3694_v30, %v2483_v45  ;;  %v2485_v46 = vpop.f32.mrb[62].mxu0  ;;  %2865 = vmatprep.mubr.bf16.mxu1 %v2583_v39 }
 0x2c0   : > { %v3697_v51 = vadd.f32 %v3696_v47, %v2485_v46  ;;  %v2487_v15 = vpop.f32.mrb[63].mxu0  ;;  %2866 = vmatmul.mubr.bf16.gmra.mrb[120].mxu1 %v2582_v31  ;;  %v2550_v59 = vmax.f32 %v3693_v32, 0.0 }
 0x2c1   : > { %v3699_v53 = vadd.f32 %v3698_v17, %v2487_v15  ;;  %v2551_v1 = vmax.f32 %v3695_v48, 0.0 }
 0x2c2   : > { %v2552_v24 = vmax.f32 %v3697_v51, 0.0 }
 0x2c3   : > { %v2553_v12 = vmax.f32 %v3699_v53, 0.0 }
 0x2c4   : > { %v2584_v0 = vpack.c.bf16 %v2552_v24, %v2550_v59 }
 0x2c5   : > { %v2585_v9 = vpack.c.bf16 %v2553_v12, %v2551_v1 }
 0x2c7   : > { %2873 = vmatprep.mubr.bf16.mxu1 %v2585_v9 }
 0x2c8   : > { %2874 = vmatmul.mubr.bf16.gmra.mrb[124].mxu1 %v2584_v0 }
 0x2c9   : > { %3506 = vmatprep.mubr.f32.mxu1 %v5183_v16 }
 0x323   : > { %v3378_v27 = vpop.f32.mrb[64].mxu1 }
 0x324   : > { %v3379_v6 = vpop.f32.mrb[65].mxu1 }
 0x325   : > { %v3380_v56 = vadd.f32 %v3379_v6, %v3378_v27  ;;  %v3381_v23 = vpop.f32.mrb[66].mxu1 }
 0x326   : > { %v3382_v7 = vpop.f32.mrb[67].mxu1 }
 0x327   : > { %v2756_v10 = vadd.f32 %v3380_v56, %v5177_v28  ;;  %v3383_v33 = vadd.f32 %v3382_v7, %v3381_v23 }
 0x329   : > { %v2759_v19 = vadd.f32 %v3383_v33, %v5177_v28  ;;  %v2882_v34 = vmax.f32 %v2756_v10, 0.0 }
 0x32b   : > { %v2883_v60 = vmax.f32 %v2759_v19, 0.0  ;;  %v3384_v35 = vpop.f32.mrb[68].mxu1 }
 0x32c   : > { %v3385_v26 = vpop.f32.mrb[69].mxu1 }
 0x32d   : > { %v5187_v54 = vpack.c.bf16 %v2883_v60, %v2882_v34  ;;  %v3386_v52 = vadd.f32 %v3385_v26, %v3384_v35  ;;  %v3387_v55 = vpop.f32.mrb[70].mxu1 }
 0x32e   : > { %v3388_v49 = vpop.f32.mrb[71].mxu1 }
 0x32f   : > { %v2764_v20 = vadd.f32 %v3386_v52, %v5177_v28  ;;  %v3389_v37 = vadd.f32 %v3388_v49, %v3387_v55 }
 0x331   : > { %v2767_v50 = vadd.f32 %v3389_v37, %v5177_v28  ;;  %v2884_v8 = vmax.f32 %v2764_v20, 0.0 }
 0x333   : > { %v2885_v11 = vmax.f32 %v2767_v50, 0.0  ;;  %v3390_v36 = vpop.f32.mrb[72].mxu1 }
 0x334   : > { %v3391_v44 = vpop.f32.mrb[73].mxu1 }
 0x335   : > { %v5191_v25 = vpack.c.bf16 %v2885_v11, %v2884_v8  ;;  %v3392_v38 = vadd.f32 %v3391_v44, %v3390_v36  ;;  %v3393_v18 = vpop.f32.mrb[74].mxu1 }
 0x336   : > { %v3394_v13 = vpop.f32.mrb[75].mxu1 }
 0x337   : > { %v2772_v41 = vadd.f32 %v3392_v38, %v5177_v28  ;;  %v3395_v21 = vadd.f32 %v3394_v13, %v3393_v18 }
 0x339   : > { %v2775_v61 = vadd.f32 %v3395_v21, %v5177_v28  ;;  %v2886_v63 = vmax.f32 %v2772_v41, 0.0 }
 0x33b   : > { %v2887_v42 = vmax.f32 %v2775_v61, 0.0  ;;  %v3396_v62 = vpop.f32.mrb[76].mxu1 }
 0x33c   : > { %v3397_v5 = vpop.f32.mrb[77].mxu1 }
 0x33d   : > { %v5195_v22 = vpack.c.bf16 %v2887_v42, %v2886_v63  ;;  %v3398_v57 = vadd.f32 %v3397_v5, %v3396_v62  ;;  %v3399_v29 = vpop.f32.mrb[78].mxu1 }
 0x33e   : > { %v3400_v4 = vpop.f32.mrb[79].mxu1 }
 0x33f   : > { %v2780_v3 = vadd.f32 %v3398_v57, %v5177_v28  ;;  %v3401_v58 = vadd.f32 %v3400_v4, %v3399_v29 }
 0x341   : > { %v2783_v14 = vadd.f32 %v3401_v58, %v5177_v28  ;;  %v2888_v43 = vmax.f32 %v2780_v3, 0.0 }
 0x343   : > { %v2889_v40 = vmax.f32 %v2783_v14, 0.0  ;;  %v3402_v31 = vpop.f32.mrb[80].mxu1 }
 0x344   : > { %v3403_v30 = vpop.f32.mrb[81].mxu1 }
 0x345   : > { %v5199_v39 = vpack.c.bf16 %v2889_v40, %v2888_v43  ;;  %v3404_v2 = vadd.f32 %v3403_v30, %v3402_v31  ;;  %v3405_v47 = vpop.f32.mrb[82].mxu1 }
 0x346   : > { %v3406_v32 = vpop.f32.mrb[83].mxu1 }
 0x347   : > { %v2788_v45 = vadd.f32 %v3404_v2, %v5177_v28  ;;  %v3407_v17 = vadd.f32 %v3406_v32, %v3405_v47 }
 0x349   : > { %v2791_v48 = vadd.f32 %v3407_v17, %v5177_v28  ;;  %v2890_v46 = vmax.f32 %v2788_v45, 0.0 }
 0x34b   : > { %v2891_v51 = vmax.f32 %v2791_v48, 0.0  ;;  %v3408_v15 = vpop.f32.mrb[84].mxu1 }
 0x34c   : > { %v3409_v53 = vpop.f32.mrb[85].mxu1 }
 0x34d   : > { %v5203_v59 = vpack.c.bf16 %v2891_v51, %v2890_v46  ;;  %v3410_v24 = vadd.f32 %v3409_v53, %v3408_v15  ;;  %v3411_v1 = vpop.f32.mrb[86].mxu1 }
 0x34e   : > { %v3412_v12 = vpop.f32.mrb[87].mxu1 }
 0x34f   : > { %v2796_v0 = vadd.f32 %v3410_v24, %v5177_v28  ;;  %v3413_v9 = vadd.f32 %v3412_v12, %v3411_v1 }
 0x351   : > { %v2799_v27 = vadd.f32 %v3413_v9, %v5177_v28  ;;  %v2892_v6 = vmax.f32 %v2796_v0, 0.0 }
 0x353   : > { %v2893_v56 = vmax.f32 %v2799_v27, 0.0  ;;  %v3414_v23 = vpop.f32.mrb[88].mxu1 }
 0x354   : > { %v3415_v7 = vpop.f32.mrb[89].mxu1 }
 0x355   : > { %v5207_v10 = vpack.c.bf16 %v2893_v56, %v2892_v6  ;;  %v3416_v33 = vadd.f32 %v3415_v7, %v3414_v23  ;;  %v3417_v19 = vpop.f32.mrb[90].mxu1 }
 0x356   : > { %v3418_v34 = vpop.f32.mrb[91].mxu1 }
 0x357   : > { %v2804_v60 = vadd.f32 %v3416_v33, %v5177_v28  ;;  %v3419_v35 = vadd.f32 %v3418_v34, %v3417_v19 }
 0x359   : > { %v2807_v26 = vadd.f32 %v3419_v35, %v5177_v28  ;;  %v2894_v52 = vmax.f32 %v2804_v60, 0.0 }
 0x35b   : > { %v2895_v55 = vmax.f32 %v2807_v26, 0.0  ;;  %v3420_v49 = vpop.f32.mrb[92].mxu1 }
 0x35c   : > { %v3421_v20 = vpop.f32.mrb[93].mxu1 }
 0x35d   : > { %v5211_v37 = vpack.c.bf16 %v2895_v55, %v2894_v52  ;;  %v3422_v50 = vadd.f32 %v3421_v20, %v3420_v49  ;;  %v3423_v8 = vpop.f32.mrb[94].mxu1 }
 0x35e   : > { %v3424_v11 = vpop.f32.mrb[95].mxu1 }
 0x35f   : > { %v2812_v36 = vadd.f32 %v3422_v50, %v5177_v28  ;;  %v3425_v44 = vadd.f32 %v3424_v11, %v3423_v8 }
 0x361   : > { %v2815_v38 = vadd.f32 %v3425_v44, %v5177_v28  ;;  %v2896_v18 = vmax.f32 %v2812_v36, 0.0 }
 0x363   : > { %v2897_v13 = vmax.f32 %v2815_v38, 0.0  ;;  %v3426_v41 = vpop.f32.mrb[96].mxu1 }
 0x364   : > { %v3427_v21 = vpop.f32.mrb[97].mxu1 }
 0x365   : > { %v5215_v61 = vpack.c.bf16 %v2897_v13, %v2896_v18  ;;  %v3428_v63 = vadd.f32 %v3427_v21, %v3426_v41  ;;  %v3429_v42 = vpop.f32.mrb[98].mxu1 }
 0x366   : > { %v3430_v62 = vpop.f32.mrb[99].mxu1 }
 0x367   : > { %v2820_v5 = vadd.f32 %v3428_v63, %v5177_v28  ;;  %v3431_v57 = vadd.f32 %v3430_v62, %v3429_v42 }
 0x369   : > { %v2823_v29 = vadd.f32 %v3431_v57, %v5177_v28  ;;  %v2898_v4 = vmax.f32 %v2820_v5, 0.0 }
 0x36b   : > { %v2899_v3 = vmax.f32 %v2823_v29, 0.0  ;;  %v3432_v58 = vpop.f32.mrb[100].mxu1 }
 0x36c   : > { %v3433_v14 = vpop.f32.mrb[101].mxu1 }
 0x36d   : > { %v3434_v43 = vadd.f32 %v3433_v14, %v3432_v58  ;;  %v3435_v40 = vpop.f32.mrb[102].mxu1  ;;  %v3508_v31 = vpack.c.bf16 %v2899_v3, %v2898_v4 }
 0x36e   : > { %v3436_v30 = vpop.f32.mrb[103].mxu1 }
 0x36f   : > { %v2828_v2 = vadd.f32 %v3434_v43, %v5177_v28  ;;  %v3437_v47 = vadd.f32 %v3436_v30, %v3435_v40  ;;  %3509 = vmatprep.subr.bf16.mxu1 %v3508_v31 }
 0x370   : > { %3511 = vmatpush3.bf16.xpose.msra.mxu1 %v5187_v54 }
 0x371   : > { %v2831_v32 = vadd.f32 %v3437_v47, %v5177_v28  ;;  %v2900_v45 = vmax.f32 %v2828_v2, 0.0 }
 0x373   : > { %v2901_v17 = vmax.f32 %v2831_v32, 0.0  ;;  %v3438_v48 = vpop.f32.mrb[104].mxu1 }
 0x374   : > { %v3439_v46 = vpop.f32.mrb[105].mxu1 }
 0x375   : > { %v3440_v51 = vadd.f32 %v3439_v46, %v3438_v48  ;;  %v3441_v15 = vpop.f32.mrb[106].mxu1  ;;  %v3512_v53 = vpack.c.bf16 %v2901_v17, %v2900_v45 }
 0x376   : > { %v3442_v24 = vpop.f32.mrb[107].mxu1 }
 0x377   : > { %v2836_v1 = vadd.f32 %v3440_v51, %v5177_v28  ;;  %v3443_v12 = vadd.f32 %v3442_v24, %v3441_v15  ;;  %3513 = vmatprep.subr.bf16.mxu1 %v3512_v53 }
 0x378   : > { %3515 = vmatpush3.bf16.xpose.msra.mxu1 %v5191_v25 }
 0x379   : > { %v2839_v0 = vadd.f32 %v3443_v12, %v5177_v28  ;;  %v2902_v9 = vmax.f32 %v2836_v1, 0.0  ;;  %v2987_v12 = vstv %s2986_s18 }
 0x37b   : > { %v2903_v54 = vmax.f32 %v2839_v0, 0.0  ;;  %v3444_v27 = vpop.f32.mrb[108].mxu1 }
 0x37c   : > { %v3445_v6 = vpop.f32.mrb[109].mxu1 }
 0x37d   : > { %v3446_v56 = vadd.f32 %v3445_v6, %v3444_v27  ;;  %v3447_v23 = vpop.f32.mrb[110].mxu1  ;;  %v3516_v7 = vpack.c.bf16 %v2903_v54, %v2902_v9 }
 0x37e   : > { %v3448_v33 = vpop.f32.mrb[111].mxu1 }
 0x37f   : > { %v2844_v19 = vadd.f32 %v3446_v56, %v5177_v28  ;;  %v3449_v34 = vadd.f32 %v3448_v33, %v3447_v23  ;;  %3517 = vmatprep.subr.bf16.mxu1 %v3516_v7 }
 0x380   : > { %3519 = vmatpush3.bf16.xpose.msra.mxu1 %v5195_v22 }
 0x381   : > { %v2847_v60 = vadd.f32 %v3449_v34, %v5177_v28  ;;  %v2904_v35 = vmax.f32 %v2844_v19, 0.0 }
 0x383   : > { %v2905_v25 = vmax.f32 %v2847_v60, 0.0  ;;  %v3450_v26 = vpop.f32.mrb[112].mxu1 }
 0x384   : > { %v3451_v52 = vpop.f32.mrb[113].mxu1 }
 0x385   : > { %v3452_v55 = vadd.f32 %v3451_v52, %v3450_v26  ;;  %v3453_v49 = vpop.f32.mrb[114].mxu1  ;;  %v3520_v20 = vpack.c.bf16 %v2905_v25, %v2904_v35 }
 0x386   : > { %v3454_v50 = vpop.f32.mrb[115].mxu1 }
 0x387   : > { %v2852_v8 = vadd.f32 %v3452_v55, %v5177_v28  ;;  %v3455_v11 = vadd.f32 %v3454_v50, %v3453_v49  ;;  %3521 = vmatprep.subr.bf16.mxu1 %v3520_v20 }
 0x388   : > { %3523 = vmatpush3.bf16.xpose.msra.mxu1 %v5199_v39 }
 0x389   : > { %v2855_v36 = vadd.f32 %v3455_v11, %v5177_v28  ;;  %v2906_v44 = vmax.f32 %v2852_v8, 0.0 }
 0x38b   : > { %v2907_v22 = vmax.f32 %v2855_v36, 0.0  ;;  %v3456_v38 = vpop.f32.mrb[116].mxu1 }
 0x38c   : > { %v3457_v18 = vpop.f32.mrb[117].mxu1 }
 0x38d   : > { %v3458_v13 = vadd.f32 %v3457_v18, %v3456_v38  ;;  %v3459_v41 = vpop.f32.mrb[118].mxu1  ;;  %v3524_v21 = vpack.c.bf16 %v2907_v22, %v2906_v44 }
 0x38e   : > { %v3460_v63 = vpop.f32.mrb[119].mxu1 }
 0x38f   : > { %v2860_v42 = vadd.f32 %v3458_v13, %v5177_v28  ;;  %v3461_v62 = vadd.f32 %v3460_v63, %v3459_v41  ;;  %3525 = vmatprep.subr.bf16.mxu1 %v3524_v21 }
 0x390   : > { %3527 = vmatpush3.bf16.xpose.msra.mxu1 %v5203_v59 }
 0x391   : > { %v2863_v5 = vadd.f32 %v3461_v62, %v5177_v28  ;;  %v2908_v57 = vmax.f32 %v2860_v42, 0.0 }
 0x393   : > { %v2909_v39 = vmax.f32 %v2863_v5, 0.0  ;;  %v3462_v29 = vpop.f32.mrb[120].mxu1 }
 0x394   : > { %v3463_v4 = vpop.f32.mrb[121].mxu1 }
 0x395   : > { %v3464_v3 = vadd.f32 %v3463_v4, %v3462_v29  ;;  %v3465_v58 = vpop.f32.mrb[122].mxu1  ;;  %v3528_v14 = vpack.c.bf16 %v2909_v39, %v2908_v57 }
 0x396   : > { %v3466_v43 = vpop.f32.mrb[123].mxu1 }
 0x397   : > { %v2868_v40 = vadd.f32 %v3464_v3, %v5177_v28  ;;  %v3467_v31 = vadd.f32 %v3466_v43, %v3465_v58  ;;  %3529 = vmatprep.subr.bf16.mxu1 %v3528_v14 }
 0x398   : > { %3531 = vmatpush3.bf16.xpose.msra.mxu1 %v5207_v10 }
 0x399   : > { %v2871_v30 = vadd.f32 %v3467_v31, %v5177_v28  ;;  %v2910_v2 = vmax.f32 %v2868_v40, 0.0 }
 0x39b   : > { %v2911_v59 = vmax.f32 %v2871_v30, 0.0  ;;  %v3468_v47 = vpop.f32.mrb[124].mxu1 }
 0x39c   : > { %v3469_v32 = vpop.f32.mrb[125].mxu1 }
 0x39d   : > { %v3470_v45 = vadd.f32 %v3469_v32, %v3468_v47  ;;  %v3471_v17 = vpop.f32.mrb[126].mxu1  ;;  %v3532_v48 = vpack.c.bf16 %v2911_v59, %v2910_v2 }
 0x39e   : > { %v3472_v46 = vpop.f32.mrb[127].mxu1 }
 0x39f   : > { %v2876_v51 = vadd.f32 %v3470_v45, %v5177_v28  ;;  %v3473_v15 = vadd.f32 %v3472_v46, %v3471_v17  ;;  %3533 = vmatprep.subr.bf16.mxu1 %v3532_v48 }
 0x3a0   : > { %3535 = vmatpush3.bf16.xpose.msra.mxu1 %v5211_v37 }
 0x3a1   : > { %v2879_v53 = vadd.f32 %v3473_v15, %v5177_v28  ;;  %v2912_v24 = vmax.f32 %v2876_v51, 0.0 }
 0x3a3   : > { %v2913_v10 = vmax.f32 %v2879_v53, 0.0 }
 0x3a5   : > { %v3536_v1 = vpack.c.bf16 %v2913_v10, %v2912_v24 }
 0x3a7   : > { %3537 = vmatprep.subr.bf16.mxu1 %v3536_v1 }
 0x3a8   : > { %3539 = vmatpush3.bf16.xpose.msra.mxu1 %v5215_v61 }
 0x3af   : > { %3507 = vmatmul.mubr.f32.vlgmr.msra.gmra.mrb[128].mxu1 %v5183_v16 }
 0x482   : > { %v2981_v0 = vpop.f32.mrb[128].mxu1 }
 0x483   : > { %v2988_v9 = vadd.f32 %v2987_v12, %v2981_v0  ;;  %v2983_v54 = vpop.f32.mrb[129].mxu1 }
 0x484   : > { %v2989_v27 = vadd.f32 %v2987_v12, %v2983_v54 }
 0x485   : > { %v2990_v6 = vsub.f32 0.0, %v2988_v9 }
 0x486   : > { %v2991_v37 = vsub.f32 0.0, %v2989_v27 }
 0x487   : > { %v2992_v56 = vmul.f32 1.442695, %v2990_v6 }
 0x488   : > { %v2994_v28 = vmul.f32 1.442695, %v2991_v37 }
 0x489   : > { %4249 = vpow2.f32 %v2992_v56 }
 0x48a   : > { %4251 = vpow2.f32 %v2994_v28 }
 0x493   : > { %v4250_v23 = vpop.eup %4249 }
 0x494   : > { %v4252_v7 = vpop.eup %4251  ;;  %v2996_v61 = vadd.f32 1.0, %v4250_v23 }
 0x495   : > { %v2997_v33 = vadd.f32 1.0, %v4252_v7 }
 0x496   : > { %4253 = vrcp.f32 %v2996_v61 }
 0x497   : > { %4255 = vrcp.f32 %v2997_v33 }
 0x4a0   : > { %v4254_v16 = vpop.eup %4253 }
 0x4a1   : > { %v4256_v19 = vpop.eup %4255  ;;  %3000 = vst [vmem:[%s327_s25] sm:$0x1] %v4254_v16 }
 0x4a2   : > { %3001 = vst [vmem:[%s327_s25 + $0x1] sm:$0x1] %v4256_v19 }
 0x4a3   : > { %4356 = shalt.err (!%p4353_p2)
}
 0x4a4   : > { %s4357_s15 = scalar_lea.hbm %s5247_s13, 32  ;;  %s4361_s18 = scalar_lea.hbm %s5298_s7, 64 }
 0x4a5   : > { %p4358_p13 = scmp.ne.s32.totalorder %s5247_s13, %s4357_s15  ;;  %p4362_p4 = scmp.lt.u32.totalorder %s5247_s13, %s5298_s7 }
 0x4a6   : > { %p4363_p7 = scmp.lt.u32.totalorder %s4361_s18, %s4357_s15  ;;  %p4365_p11 = scmp.lt.u32.totalorder %s4357_s15, %s5247_s13 }
 0x4a7   : > { %p4359_p6 = pnand %p4358_p13, %p5336_p0 }
 0x4a8   : > { %p4364_p8 = por %p4363_p7, %p4362_p4 }
 0x4a9   : > { %p4360_p10 = pneg %p4359_p6 }
 0x4aa   : > { %p4366_p1 = por %p4365_p11, %p4364_p8 }
 0x4ac   : > { %p4367_p3 = pnand %p4366_p1, %p4360_p10 }
 0x4ae   : > { %4370 = shalt.err (!%p4367_p3)
}
 0x4af   : > { %3841 = dma.vmem_to_hbm [thread:$0]  (%p5336_p0), %s5249_s14, 32, %s5247_s13, %s3003_s8  }
 0x4b0 PF: > { %s3028_s25 = sand.u32 1, %s4401_s26   ;;  %p5337_p5 = scmp.ne.s32.totalorder %s5303_s9, 0 }
 0x4b1   : > { %p5338_p9 = scmp.ge.s32.totalorder %s4413_s29, 2  ;;  %s3029_s20 = scalar_lea.sflag [#allocation5], %s3028_s25 }
 0x4b3   : > { %p3855_p12 = pnand %p5338_p9, %p5337_p5 }
 0x4b5   : > { %4396 = dma.done.wait (!%p3855_p12), %s3029_s20, 32  }
 0x4b6   : > { %4398 = vsyncadd (!%p3855_p12), %s3029_s20, 4294967264  ;;  %p22_p2 = scmp.ge.s32.totalorder %s4579_s30, 4   ;;  %s5339_s26 = smov %s4405_s27 }
 0x4b7   : > { %s5340_s27 = smov %s4409_s28  ;;  %s5341_s28 = smov %s4588_s16 }
 0x4b8   : > { %s5342_s29 = smov %s4579_s30  ;;  %24 = sbr.rel (!%p22_p2) target bundleno = 8 (0x8), region = 101 }
 0x4bf   :  { %3034 = vsyncpa [#allocation4], 1 }
 0x4c0   :  { %3036 = vsyncpa [#allocation4 + $0x1], 1 }
 0x4c1   :  { %3037 = vsyncpa [#allocation7], 1 }
 0x4c2   :  { %3038 = vsyncpa [#allocation5], 1 }
 0x4c3   :  { %3040 = vsyncpa [#allocation5 + $0x1], 1 }

</bundles_post_ra>
